<compile_context>
chip_gen: v5e
topology: v5e:2x2
jax: 0.10.0
libtpu: 0.0.40
codegen_flags: <defaults>
</compile_context>

<pallas_src>
import functools

import jax
import jax.numpy as jnp
from jax.experimental import pallas as pl
from jax.experimental.pallas import tpu as pltpu


def _round_up(x, m):
    return (x + m - 1) // m * m


def _apply_embed(h, w_ref, nlayers, mlp_act):
    """Per-layer diagonal scale + mlp_act (between layers) + row L2 normalize."""
    h = h.astype(jnp.float32)
    for l in range(nlayers):
        h = h * w_ref[l, :][None, :]              # x @ diag(w) == columnwise scale
        if l != nlayers - 1:
            if mlp_act == "relu":
                h = jnp.maximum(h, 0.0)
            elif mlp_act == "tanh":
                h = jnp.tanh(h)
    norm = jnp.sqrt(jnp.sum(h * h, axis=1, keepdims=True))
    return h / jnp.maximum(norm, 1e-12)           # F.normalize(h, dim=1, p=2)


# ---------------------------------------------------------------------------
# Kernel 1 (tiny): embeddings pre-transposed to lane-dense (D, N)
# ---------------------------------------------------------------------------
def _embed_t_kernel(feat_ref, w_ref, embt_ref, *, nlayers, mlp_act):
    e = _apply_embed(feat_ref[...], w_ref, nlayers, mlp_act)     # (tm, D)
    embt_ref[...] = e.T.astype(embt_ref.dtype)                   # (D, tm)


# ---------------------------------------------------------------------------
# Kernel 2: fused embed(query tile) + E @ E.T + top-(k+1) mask + ReLU
# ---------------------------------------------------------------------------
def _sim_topk_kernel(feat_ref, w_ref, et_ref, out_ref, *,
                     k, tm, nlayers, mlp_act, use_argmax):
    # Query-tile embeddings recomputed in-kernel (trivial VPU work hidden under
    # the matmul / top-k; no (N, D) embedding HBM round-trip for the query).
    q = _apply_embed(feat_ref[...], w_ref, nlayers, mlp_act)         # (tm, D)
    # Canonical (tm, D) x (D, N) MXU contraction against the lane-dense
    # pre-transposed embeddings.
    s = jnp.dot(q, et_ref[...], preferred_element_type=jnp.float32)  # (tm, N)
    n = s.shape[1]

    col_ids = jax.lax.broadcasted_iota(jnp.int32, (tm, n), 1)
    row_ids = jax.lax.broadcasted_iota(jnp.int32, (tm, n), 0)
    diag = col_ids == (pl.program_id(0) * tm + row_ids)

    neg = jnp.finfo(jnp.float32).min
    # Pre-seed selection with the diagonal (s[i,i] == 1 is the row max for
    # L2-normalized rows), then pick the remaining k entries.  Raw `s` values
    # are accumulated; a single relu at the end equals relu(s * mask) since
    # masked-out entries stay 0.  (Only differs from torch.topk if >= k+1
    # columns tie at exactly 1.0, i.e. exact duplicate normalized rows.)
    out = jnp.where(diag, s, 0.0)
    work = jnp.where(diag, neg, s)
    for step in range(k):
        if use_argmax:
            # First-occurrence argmax == tie-break toward the lowest column.
            first = jnp.argmax(work, axis=-1, keepdims=True).astype(jnp.int32)
        else:
            # Fallback: max, then lowest index among the maxima.
            mval = jnp.max(work, axis=-1, keepdims=True)
            first = jnp.min(jnp.where(work == mval, col_ids, n),
                            axis=-1, keepdims=True)
        onehot = col_ids == first
        out = jnp.where(onehot, s, out)
        if step != k - 1:                          # last `work` update not needed
            work = jnp.where(onehot, neg, work)

    out_ref[...] = jnp.maximum(out, 0.0).astype(out_ref.dtype)


# ---------------------------------------------------------------------------
# Helpers: argmax-lowering probe and VMEM budgeting
# ---------------------------------------------------------------------------
@functools.lru_cache(maxsize=None)
def _pallas_argmax_supported():
    """AOT-compile a tiny kernel to check jnp.argmax lowers on this Mosaic build."""
    def probe(x_ref, o_ref):
        x = x_ref[...]
        col = jax.lax.broadcasted_iota(jnp.int32, x.shape, 1)
        first = jnp.argmax(x, axis=-1, keepdims=True).astype(jnp.int32)
        o_ref[...] = jnp.where(col == first, 1.0, 0.0).astype(o_ref.dtype)

    try:
        f = pl.pallas_call(
            probe, out_shape=jax.ShapeDtypeStruct((8, 128), jnp.float32))
        jax.jit(f).lower(jax.ShapeDtypeStruct((8, 128), jnp.float32)).compile()
        return True
    except Exception:
        return False


def _vmem_capacity_bytes():
    try:
        return int(pltpu.get_tpu_info().vmem_capacity_bytes)
    except Exception:
        return 64 * 1024 * 1024                    # conservative (v7x physical VMEM)


def _sim_vmem_budget(tm, n, d):
    lane_d = max(d, 128)                           # (tm, D) input pads to 128 lanes
    tile = tm * n * 4
    est = (2 * tm * lane_d * 4                     # query feature tile, double-buffered
           + 2 * d * n * 4                         # invariant (D, N) block, double-buffered
           + 2 * tile                              # output tile, double-buffered
           + 8 * tile)                             # top-k temporaries (s, out, work, iotas, masks)
    cap = _vmem_capacity_bytes() * 3 // 4          # headroom below physical VMEM
    return int(min(max(int(est * 1.5), 32 * 1024 * 1024), cap))


# ---------------------------------------------------------------------------
# Wrapper
# ---------------------------------------------------------------------------
def att_learner_forward(features, weights, *, k, mlp_act="relu"):
    """Dense (sparse=False) forward of ATT_learner.

    features: (N, D) float32
    weights:  (nlayers, D) float32 -- one diagonal-weight vector per layer
    Returns (N, N) float32 sparse-masked relu'd similarity graph.
    """
    n, d = features.shape
    nlayers = weights.shape[0]

    # Pad rows to a lane-dense multiple of 128.  Padded (all-zero) rows/cols
    # cannot change any relu'd output value: a padded column (similarity 0,
    # highest index, so it loses all ties against real columns) can only
    # displace a strictly-negative entry from the top-(k+1) set, and that
    # entry relu's to 0 either way.
    n_pad = _round_up(n, 128)
    # Single grid step for small problems (drops pipeline prologue/epilogue
    # and per-step overhead); 128-row tiles otherwise so output writeback of
    # step i-1 overlaps compute of step i.
    tm = n_pad if n_pad <= 512 else 128

    feats = features.astype(jnp.float32)
    if n_pad != n:
        feats = jnp.pad(feats, ((0, n_pad - n), (0, 0)))
    w32 = weights.astype(jnp.float32)

    grid = (n_pad // tm,)

    # --- tiny kernel: embeddings, stored transposed / lane-dense as (D, N) ---
    emb_t = pl.pallas_call(
        functools.partial(_embed_t_kernel, nlayers=nlayers, mlp_act=mlp_act),
        out_shape=jax.ShapeDtypeStruct((d, n_pad), jnp.float32),
        grid_spec=pltpu.PrefetchScalarGridSpec(
            num_scalar_prefetch=0,
            grid=grid,
            in_specs=[
                pl.BlockSpec((tm, d), lambda i: (i, 0)),
                pl.BlockSpec((nlayers, d), lambda i: (0, 0)),
            ],
            out_specs=pl.BlockSpec((d, tm), lambda i: (0, i)),
        ),
        compiler_params=pltpu.CompilerParams(
            dimension_semantics=("parallel",)),
    )(feats, w32)

    # --- fused embed + similarity + top-(k+1) mask + relu, tiled over rows ---
    sim = pl.pallas_call(
        functools.partial(_sim_topk_kernel, k=int(k), tm=tm, nlayers=nlayers,
                          mlp_act=mlp_act, use_argmax=_pallas_argmax_supported()),
        out_shape=jax.ShapeDtypeStruct((n_pad, n_pad), jnp.float32),
        grid_spec=pltpu.PrefetchScalarGridSpec(
            num_scalar_prefetch=0,
            grid=grid,
            in_specs=[
                pl.BlockSpec((tm, d), lambda i: (i, 0)),         # query feature tile
                pl.BlockSpec((nlayers, d), lambda i: (0, 0)),    # all layer weights
                pl.BlockSpec((d, n_pad), lambda i: (0, 0)),      # invariant (D, N) embeddings
            ],
            out_specs=pl.BlockSpec((tm, n_pad), lambda i: (i, 0)),
        ),
        compiler_params=pltpu.CompilerParams(
            dimension_semantics=("parallel",),
            vmem_limit_bytes=_sim_vmem_budget(tm, n_pad, d)),
    )(feats, w32, emb_t)

    if n_pad != n:
        sim = sim[:n, :n]
    return sim


# ---------------------------------------------------------------------------
# Pure-JAX reference (mirrors the PyTorch code)
# ---------------------------------------------------------------------------
def _ref_forward(features, weights, *, k, mlp_act="relu"):
    h = features
    nlayers = weights.shape[0]
    for l in range(nlayers):
        h = h * weights[l]
        if l != nlayers - 1:
            if mlp_act == "relu":
                h = jnp.maximum(h, 0.0)
            elif mlp_act == "tanh":
                h = jnp.tanh(h)
    norm = jnp.sqrt(jnp.sum(h * h, axis=1, keepdims=True))
    h = h / jnp.maximum(norm, 1e-12)
    s = h @ h.T
    _, idx = jax.lax.top_k(s, k + 1)
    mask = jnp.zeros_like(s).at[jnp.arange(s.shape[0])[:, None], idx].set(1.0)
    return jnp.maximum(s * mask, 0.0)


if __name__ == "__main__":
    # Module hyperparameters (nlayers, isize, k, knn_metric, i, sparse, mlp_act)
    nlayers = 2
    isize = 32
    k = 6
    mlp_act = "relu"

    key = jax.random.PRNGKey(0)
    # N=200: padding + single-grid-step path.  N=384: 3-step pipelined path.
    for N in (200, 384):
        kf, kw, key = jax.random.split(key, 3)
        features = jax.random.normal(kf, (N, isize), dtype=jnp.float32)
        # nn.Parameter(torch.ones(isize)) per layer is the module init; perturb
        # slightly so the diagonal-scaling path is actually exercised.
        weights = 1.0 + 0.1 * jax.random.normal(kw, (nlayers, isize),
                                                dtype=jnp.float32)

        out = att_learner_forward(features, weights, k=k, mlp_act=mlp_act)
        out = jax.block_until_ready(out)

        ref = _ref_forward(features, weights, k=k, mlp_act=mlp_act)
        assert out.shape == (N, N)
        assert jnp.allclose(out, ref, atol=1e-5, rtol=1e-5), \
            f"mismatch vs reference at N={N}"

    print("KERNEL_OK")
</pallas_src>

<mosaic_0001>
module attributes {stable_mosaic.version = 11 : i64} {
  func.func @_embed_t_kernel(%arg0: i32, %arg1: memref<256x32xf32, #tpu.memory_space<vmem>>, %arg2: memref<2x32xf32, #tpu.memory_space<vmem>>, %arg3: memref<32x256xf32, #tpu.memory_space<vmem>>) attributes {dimension_semantics = [#tpu.dimension_semantics<parallel>], iteration_bounds = array<i64: 1>, scalar_prefetch = 0 : i64, scratch_operands = 0 : i64, tpu.core_type = #tpu.core_type<tc>, window_params = [{transform_indices = @transform_0, window_bounds = array<i64: 256, 32>}, {pipeline_mode = #tpu.pipeline_mode<synchronous>, transform_indices = @transform_1, window_bounds = array<i64: 2, 32>}, {transform_indices = @transform_2, window_bounds = array<i64: 32, 256>}]} {
    %c0 = arith.constant 0 : index
    %c0_0 = arith.constant 0 : index
    %0 = vector.load %arg1[%c0, %c0_0] : memref<256x32xf32, #tpu.memory_space<vmem>>, vector<256x32xf32>
    %c0_1 = arith.constant 0 : index
    %c0_2 = arith.constant 0 : index
    %1 = vector.load %arg2[%c0_1, %c0_2] : memref<2x32xf32, #tpu.memory_space<vmem>>, vector<1x32xf32>
    %2 = vector.shape_cast %1 : vector<1x32xf32> to vector<32xf32>
    %3 = vector.shape_cast %2 : vector<32xf32> to vector<1x32xf32>
    %4 = vector.broadcast %3 : vector<1x32xf32> to vector<256x32xf32>
    %5 = arith.mulf %0, %4 : vector<256x32xf32>
    %cst = arith.constant 0.000000e+00 : f32
    %6 = vector.broadcast %cst : f32 to vector<256x32xf32>
    %7 = arith.maximumf %5, %6 : vector<256x32xf32>
    %c1 = arith.constant 1 : index
    %c0_3 = arith.constant 0 : index
    %8 = vector.load %arg2[%c1, %c0_3] : memref<2x32xf32, #tpu.memory_space<vmem>>, vector<1x32xf32>
    %9 = vector.shape_cast %8 : vector<1x32xf32> to vector<32xf32>
    %10 = vector.shape_cast %9 : vector<32xf32> to vector<1x32xf32>
    %11 = vector.broadcast %10 : vector<1x32xf32> to vector<256x32xf32>
    %12 = arith.mulf %7, %11 : vector<256x32xf32>
    %13 = arith.mulf %12, %12 : vector<256x32xf32>
    %cst_4 = arith.constant dense<0.000000e+00> : vector<256xf32>
    %14 = vector.multi_reduction <add>, %13, %cst_4 [1] : vector<256x32xf32> to vector<256xf32>
    %15 = vector.shape_cast %14 : vector<256xf32> to vector<256x1xf32>
    %16 = math.sqrt %15 : vector<256x1xf32>
    %cst_5 = arith.constant 9.99999996E-13 : f32
    %17 = vector.broadcast %cst_5 : f32 to vector<256x1xf32>
    %18 = arith.maximumf %16, %17 : vector<256x1xf32>
    %19 = vector.broadcast %18 : vector<256x1xf32> to vector<256x32xf32>
    %20 = arith.divf %12, %19 : vector<256x32xf32>
    %21 = tpu.transpose %20, [1, 0] : vector<256x32xf32> -> vector<32x256xf32>
    %c0_6 = arith.constant 0 : index
    %c0_7 = arith.constant 0 : index
    %22 = vector.load %arg3[%c0_6, %c0_7] : memref<32x256xf32, #tpu.memory_space<vmem>>, vector<32x256xf32>
    tpu.vector_store %arg3[%c0_6, %c0_7], %21 {strides = array<i32>} : memref<32x256xf32, #tpu.memory_space<vmem>>, vector<32x256xf32>,
    return
  }
  func.func @transform_0(%arg0: i32) -> (i32, i32) {
    %c0_i32 = arith.constant 0 : i32
    %c0_i32_0 = arith.constant 0 : i32
    return %arg0, %c0_i32 : i32, i32
  }
  func.func @transform_1(%arg0: i32) -> (i32, i32) {
    %c0_i32 = arith.constant 0 : i32
    %c0_i32_0 = arith.constant 0 : i32
    %c0_i32_1 = arith.constant 0 : i32
    return %c0_i32, %c0_i32_0 : i32, i32
  }
  func.func @transform_2(%arg0: i32) -> (i32, i32) {
    %c0_i32 = arith.constant 0 : i32
    %c0_i32_0 = arith.constant 0 : i32
    return %c0_i32, %arg0 : i32, i32
  }
}

</mosaic_0001>

<bundles_post_ra>
// kernel: tpu_custom_call.1
= control target key start
LH: loop header
LB: loop body
LE: loop exit
PB: predicated region body
PF: predicated region fallthrough
CT: control target
= control target key end

     0   :  { %s2796_s0 = inlined_call_operand.vmem [shape: f32[256,32], index: 0, kind: input, shape index: {}]   ;;  %s2797_s1 = inlined_call_operand.vmem [shape: f32[2,32], index: 1, kind: input, shape index: {}]   ;;  %s2798_s2 = inlined_call_operand.hbm [shape: f32[32,256], index: 2, kind: output, shape index: {}]  }
   0x1   :  { %v16_v0 = vld [vmem:[%s2796_s0 + $0x20] sm:$0xff]  ;;  %v14_v3 = vld [vmem:[%s2796_s0 + $0x10] sm:$0xff]  ;;  %v17_v7 = vld [vmem:[%s2796_s0 + $0x28] sm:$0xff] }
   0x2   :  { %v1442_v1 = vld [vmem:[%s2797_s1] ss:$0 sm:$0xff]  ;;  %v1447_v2 = vld [vmem:[%s2797_s1 + $0x1] ss:$0 sm:$0xff]  ;;  %v15_v8 = vld [vmem:[%s2796_s0 + $0x18] sm:$0xff] }
   0x3   :  { %v50_v4 = vmul.f32 %v1442_v1, %v16_v0  ;;  %v48_v5 = vmul.f32 %v1442_v1, %v14_v3  ;;  %v12_v6 = vld [vmem:[%s2796_s0] sm:$0xff]  ;;  %v51_v10 = vmul.f32 %v1442_v1, %v17_v7  ;;  %v49_v11 = vmul.f32 %v1442_v1, %v15_v8  ;;  %v13_v12 = vld [vmem:[%s2796_s0 + $0x8] sm:$0xff]  ;;  %v19_v17 = vld [vmem:[%s2796_s0 + $0x38] sm:$0xff] }
   0x4   :  { %v46_v9 = vmul.f32 %v1442_v1, %v12_v6  ;;  %v47_v15 = vmul.f32 %v1442_v1, %v13_v12  ;;  %v20_v16 = vld [vmem:[%s2796_s0 + $0x40] sm:$0xff] }
   0x5   :  { %v82_v13 = vmax.f32 %v50_v4, 0.0  ;;  %v80_v14 = vmax.f32 %v48_v5, 0.0  ;;  %v83_v19 = vmax.f32 %v51_v10, 0.0  ;;  %v81_v20 = vmax.f32 %v49_v11, 0.0 }
   0x6   :  { %v78_v18 = vmax.f32 %v46_v9, 0.0  ;;  %v79_v23 = vmax.f32 %v47_v15, 0.0 }
   0x7   :  { %v1477_v21 = vmul.f32 %v1447_v2, %v82_v13  ;;  %v1480_v22 = vmul.f32 %v1447_v2, %v80_v14 }
   0x8   :  { %7 = vsyncpa [#allocation3], 0  ;;  %vm176_vm0 = vcmask 261120   ;;  %v1483_v24 = vmul.f32 %v1447_v2, %v78_v18  ;;  %v54_v25 = vmul.f32 %v1442_v1, %v20_v16  ;;  %v53_v26 = vmul.f32 %v1442_v1, %v19_v17  ;;  %v18_v33 = vld [vmem:[%s2796_s0 + $0x30] sm:$0xff]  ;;  %v23_v43 = vld [vmem:[%s2796_s0 + $0x58] sm:$0xff]  ;;  %s1247_s22 = sshll.u32 %s2798_s2, 4  ;;  %s1248_s22 = int_to_ptr.hbm [resolvable:$true] %s1247_s22 }
   0x9   :  { %v148_v27 = vmul.f32 %v1477_v21, %v1477_v21  ;;  %v146_v28 = vmul.f32 %v1480_v22, %v1480_v22  ;;  %v1492_v29 = vmul.f32 %v1447_v2, %v83_v19  ;;  %v1495_v30 = vmul.f32 %v1447_v2, %v81_v20  ;;  %v22_v44 = vld [vmem:[%s2796_s0 + $0x50] sm:$0xff]  ;;  %v21_v46 = vld [vmem:[%s2796_s0 + $0x48] sm:$0xff]  ;;  %v24_v0 = vld [vmem:[%s2796_s0 + $0x60] sm:$0xff]  ;;  %s1419_s1 = smov 256   ;;  %s1420_s23 = smov 16  }
   0xa   :  { %v144_v31 = vmul.f32 %v1483_v24, %v1483_v24  ;;  %v1500_v32 = vmul.f32 %v1447_v2, %v79_v23  ;;  %v86_v37 = vmax.f32 %v54_v25, 0.0  ;;  %v85_v38 = vmax.f32 %v53_v26, 0.0  ;;  %v26_v60 = vld [vmem:[%s2796_s0 + $0x70] sm:$0xff]  ;;  %v25_v63 = vld [vmem:[%s2796_s0 + $0x68] sm:$0xff]  ;;  %v28_v19 = vld [vmem:[%s2796_s0 + $0x80] sm:$0xff] }
   0xb   :  { %v189_v34 = vsel %vm176_vm0, %v148_v27, 0.0  ;;  %v183_v35 = vsel %vm176_vm0, %v146_v28, 0.0  ;;  %v149_v39 = vmul.f32 %v1492_v29, %v1492_v29  ;;  %v147_v40 = vmul.f32 %v1495_v30, %v1495_v30  ;;  %v29_v16 = vld [vmem:[%s2796_s0 + $0x88] sm:$0xff]  ;;  %v27_v20 = vld [vmem:[%s2796_s0 + $0x78] sm:$0xff] }
   0xc   :  { %190 = vadd.xlane.f32.xlu2 %v189_v34  ;;  %184 = vadd.xlane.f32.xlu1 %v183_v35  ;;  %v177_v36 = vsel %vm176_vm0, %v144_v31, 0.0  ;;  %v52_v41 = vmul.f32 %v1442_v1, %v18_v33  ;;  %v145_v42 = vmul.f32 %v1500_v32, %v1500_v32  ;;  %v1525_v47 = vmul.f32 %v1447_v2, %v86_v37 }
   0xd   :  { %178 = vadd.xlane.f32.xlu0 %v177_v36  ;;  %v1528_v48 = vmul.f32 %v1447_v2, %v85_v38  ;;  %v192_v49 = vsel %vm176_vm0, %v149_v39, 0.0  ;;  %v186_v50 = vsel %vm176_vm0, %v147_v40, 0.0  ;;  %v57_v51 = vmul.f32 %v1442_v1, %v23_v43  ;;  %v31_v43 = vld [vmem:[%s2796_s0 + $0x98] sm:$0xff] }
   0xe   :  { %v84_v45 = vmax.f32 %v52_v41, 0.0  ;;  %v56_v52 = vmul.f32 %v1442_v1, %v22_v44  ;;  %v180_v53 = vsel %vm176_vm0, %v145_v42, 0.0  ;;  %v55_v55 = vmul.f32 %v1442_v1, %v21_v46  ;;  %v32_v42 = vld [vmem:[%s2796_s0 + $0xa0] sm:$0xff]  ;;  %v30_v44 = vld [vmem:[%s2796_s0 + $0x90] sm:$0xff] }
   0xf   :  { %v152_v56 = vmul.f32 %v1525_v47, %v1525_v47  ;;  %v151_v57 = vmul.f32 %v1528_v48, %v1528_v48  ;;  %v89_v58 = vmax.f32 %v57_v51, 0.0  ;;  %v60_v4 = vmul.f32 %v1442_v1, %v26_v60 }
  0x10   :  { %v1536_v54 = vmul.f32 %v1447_v2, %v84_v45  ;;  %v88_v59 = vmax.f32 %v56_v52, 0.0  ;;  %v87_v62 = vmax.f32 %v55_v55, 0.0  ;;  %v59_v8 = vmul.f32 %v1442_v1, %v25_v63 }
  0x11   :  { %v201_v3 = vsel %vm176_vm0, %v152_v56, 0.0  ;;  %v198_v5 = vsel %vm176_vm0, %v151_v57, 0.0  ;;  %v1558_v6 = vmul.f32 %v1447_v2, %v89_v58  ;;  %v58_v11 = vmul.f32 %v1442_v1, %v24_v0 }
  0x12   :  { %v150_v61 = vmul.f32 %v1536_v54, %v1536_v54  ;;  %v1561_v7 = vmul.f32 %v1447_v2, %v88_v59  ;;  %v1566_v10 = vmul.f32 %v1447_v2, %v87_v62  ;;  %v92_v12 = vmax.f32 %v60_v4, 0.0  ;;  %v35_v62 = vld [vmem:[%s2796_s0 + $0xb8] sm:$0xff] }
  0x13   :  { %2825 = vst [vmem:[#allocation5_spill] sm:$0xff] %v1558_v6  ;;  %v155_v13 = vmul.f32 %v1558_v6, %v1558_v6  ;;  %v91_v15 = vmax.f32 %v59_v8, 0.0  ;;  %v90_v18 = vmax.f32 %v58_v11, 0.0  ;;  %v63_v25 = vmul.f32 %v1442_v1, %v29_v16 }
  0x14   :  { %193 = vadd.xlane.f32.xlu2 %v192_v49  ;;  %187 = vadd.xlane.f32.xlu1 %v186_v50  ;;  %2826 = vst [vmem:[#allocation6_spill] sm:$0xff] %v1561_v7  ;;  %v195_v9 = vsel %vm176_vm0, %v150_v61, 0.0  ;;  %v154_v14 = vmul.f32 %v1561_v7, %v1561_v7  ;;  %v153_v17 = vmul.f32 %v1566_v10, %v1566_v10  ;;  %v34_v61 = vld [vmem:[%s2796_s0 + $0xb0] sm:$0xff] }
  0x15   :  { %181 = vadd.xlane.f32.xlu0 %v180_v53  ;;  %v1585_v23 = vmul.f32 %v1447_v2, %v92_v12  ;;  %v210_v26 = vsel %vm176_vm0, %v155_v13, 0.0  ;;  %v1591_v28 = vmul.f32 %v1447_v2, %v91_v15  ;;  %v62_v31 = vmul.f32 %v1442_v1, %v28_v19 }
  0x16   :  { %v207_v27 = vsel %vm176_vm0, %v154_v14, 0.0  ;;  %v204_v33 = vsel %vm176_vm0, %v153_v17, 0.0  ;;  %v1596_v34 = vmul.f32 %v1447_v2, %v90_v18  ;;  %v61_v35 = vmul.f32 %v1442_v1, %v27_v20 }
  0x17   :  { %2827 = vst [vmem:[#allocation7_spill] sm:$0xff] %v1585_v23  ;;  %v158_v36 = vmul.f32 %v1585_v23, %v1585_v23  ;;  %v95_v37 = vmax.f32 %v63_v25, 0.0  ;;  %v157_v38 = vmul.f32 %v1591_v28, %v1591_v28  ;;  %v94_v39 = vmax.f32 %v62_v31, 0.0  ;;  %v36_v31 = vld [vmem:[%s2796_s0 + $0xc0] sm:$0xff] }
  0x18   :  { %2828 = vst [vmem:[#allocation8_spill] sm:$0xff] %v1591_v28  ;;  %v156_v40 = vmul.f32 %v1596_v34, %v1596_v34  ;;  %v93_v41 = vmax.f32 %v61_v35, 0.0  ;;  %v66_v51 = vmul.f32 %v1442_v1, %v32_v42  ;;  %v65_v52 = vmul.f32 %v1442_v1, %v31_v43 }
  0x19   :  { %2829 = vst [vmem:[#allocation9_spill] sm:$0xff] %v1596_v34  ;;  %v219_v45 = vsel %vm176_vm0, %v158_v36, 0.0  ;;  %v1616_v46 = vmul.f32 %v1447_v2, %v95_v37  ;;  %v216_v49 = vsel %vm176_vm0, %v157_v38, 0.0  ;;  %v1620_v50 = vmul.f32 %v1447_v2, %v94_v39 }
  0x1a   :  { %v213_v53 = vsel %vm176_vm0, %v156_v40, 0.0  ;;  %v1626_v55 = vmul.f32 %v1447_v2, %v93_v41  ;;  %v64_v56 = vmul.f32 %v1442_v1, %v30_v44  ;;  %v98_v59 = vmax.f32 %v66_v51, 0.0 }
  0x1b   :  { %v161_v57 = vmul.f32 %v1616_v46, %v1616_v46  ;;  %v160_v58 = vmul.f32 %v1620_v50, %v1620_v50  ;;  %v97_v60 = vmax.f32 %v65_v52, 0.0  ;;  %v68_v4 = vmul.f32 %v1442_v1, %v34_v61 }
  0x1c   :  { %202 = vadd.xlane.f32.xlu2 %v201_v3  ;;  %199 = vadd.xlane.f32.xlu1 %v198_v5  ;;  %2830 = vst [vmem:[#allocation10_spill] sm:$0xff] %v1626_v55  ;;  %v159_v63 = vmul.f32 %v1626_v55, %v1626_v55  ;;  %v96_v0 = vmax.f32 %v64_v56, 0.0  ;;  %v33_v3 = vld [vmem:[%s2796_s0 + $0xa8] sm:$0xff]  ;;  %v69_v5 = vmul.f32 %v1442_v1, %v35_v62 }
  0x1d   :  { %196 = vadd.xlane.f32.xlu0 %v195_v9  ;;  %v228_v8 = vsel %vm176_vm0, %v161_v57, 0.0  ;;  %v225_v9 = vsel %vm176_vm0, %v160_v58, 0.0  ;;  %v1649_v11 = vmul.f32 %v1447_v2, %v98_v59  ;;  %v1652_v12 = vmul.f32 %v1447_v2, %v97_v60  ;;  %v41_v56 = vld [vmem:[%s2796_s0 + $0xe8] sm:$0xff]  ;;  %v39_v57 = vld [vmem:[%s2796_s0 + $0xd8] sm:$0xff] }
  0x1e   :  { %v222_v13 = vsel %vm176_vm0, %v159_v63, 0.0  ;;  %v1656_v14 = vmul.f32 %v1447_v2, %v96_v0  ;;  %v67_v15 = vmul.f32 %v1442_v1, %v33_v3  ;;  %v100_v16 = vmax.f32 %v68_v4, 0.0 }
  0x1f   :  { %2831 = vst [vmem:[#allocation11_spill] sm:$0xff] %v1649_v11  ;;  %v101_v17 = vmax.f32 %v69_v5, 0.0  ;;  %v164_v18 = vmul.f32 %v1649_v11, %v1649_v11  ;;  %v163_v19 = vmul.f32 %v1652_v12, %v1652_v12  ;;  %v70_v42 = vmul.f32 %v1442_v1, %v36_v31 }
  0x20   :  { %v162_v20 = vmul.f32 %v1656_v14, %v1656_v14  ;;  %v99_v25 = vmax.f32 %v67_v15, 0.0  ;;  %v75_v63 = vmul.f32 %v1442_v1, %v41_v56  ;;  %v73_v4 = vmul.f32 %v1442_v1, %v39_v57 }
  0x21   :  { %v1678_v35 = vmul.f32 %v1447_v2, %v101_v17  ;;  %v237_v36 = vsel %vm176_vm0, %v164_v18, 0.0  ;;  %v234_v37 = vsel %vm176_vm0, %v163_v19, 0.0  ;;  %v102_v52 = vmax.f32 %v70_v42, 0.0 }
  0x22   :  { %v231_v40 = vsel %vm176_vm0, %v162_v20, 0.0  ;;  %v1686_v41 = vmul.f32 %v1447_v2, %v99_v25 }
  0x23   :  { %2833 = vst [vmem:[#allocation13_spill] sm:$0xff] %v1678_v35  ;;  %v167_v44 = vmul.f32 %v1678_v35, %v1678_v35  ;;  %v1716_v3 = vmul.f32 %v1447_v2, %v102_v52 }
  0x24   :  { %211 = vadd.xlane.f32.xlu2 %v210_v26  ;;  %208 = vadd.xlane.f32.xlu1 %v207_v27  ;;  %v37_v26 = vld [vmem:[%s2796_s0 + $0xc8] sm:$0xff]  ;;  %v38_v27 = vld [vmem:[%s2796_s0 + $0xd0] sm:$0xff]  ;;  %2834 = vst [vmem:[#allocation14_spill] sm:$0xff] %v1686_v41  ;;  %v165_v51 = vmul.f32 %v1686_v41, %v1686_v41 }
  0x25   :  { %205 = vadd.xlane.f32.xlu0 %v204_v33  ;;  %v1675_v33 = vmul.f32 %v1447_v2, %v100_v16  ;;  %v71_v38 = vmul.f32 %v1442_v1, %v37_v26  ;;  %v72_v39 = vmul.f32 %v1442_v1, %v38_v27  ;;  %v246_v59 = vsel %vm176_vm0, %v167_v44, 0.0  ;;  %2837 = vst [vmem:[#allocation17_spill] sm:$0xff] %v1716_v3 }
  0x26   :  { %v240_v0 = vsel %vm176_vm0, %v165_v51, 0.0  ;;  %v168_v15 = vmul.f32 %v1716_v3, %v1716_v3  ;;  %v105_v16 = vmax.f32 %v73_v4, 0.0  ;;  %v43_v51 = vld [vmem:[%s2796_s0 + $0xf8] sm:$0xff] }
  0x27   :  { %2832 = vst [vmem:[#allocation12_spill] sm:$0xff] %v1675_v33  ;;  %v166_v43 = vmul.f32 %v1675_v33, %v1675_v33  ;;  %v77_v52 = vmul.f32 %v1442_v1, %v43_v51 }
  0x28   :  { %v249_v25 = vsel %vm176_vm0, %v168_v15, 0.0  ;;  %v1735_v26 = vmul.f32 %v1447_v2, %v105_v16 }
  0x29   :  { %v243_v58 = vsel %vm176_vm0, %v166_v43, 0.0 }
  0x2a   :  { %2840 = vst [vmem:[#allocation20_spill] sm:$0xff] %v1735_v26 }
  0x2c   :  { %220 = vadd.xlane.f32.xlu2 %v219_v45  ;;  %217 = vadd.xlane.f32.xlu1 %v216_v49  ;;  %v103_v45 = vmax.f32 %v71_v38, 0.0  ;;  %v104_v49 = vmax.f32 %v72_v39, 0.0 }
  0x2d   :  { %214 = vadd.xlane.f32.xlu0 %v213_v53  ;;  %v40_v53 = vld [vmem:[%s2796_s0 + $0xe0] sm:$0xff] }
  0x2e   :  { %v1707_v60 = vmul.f32 %v1447_v2, %v103_v45  ;;  %v1710_v61 = vmul.f32 %v1447_v2, %v104_v49  ;;  %v74_v62 = vmul.f32 %v1442_v1, %v40_v53  ;;  %v109_v53 = vmax.f32 %v77_v52, 0.0 }
  0x30   :  { %2835 = vst [vmem:[#allocation15_spill] sm:$0xff] %v1707_v60  ;;  %v169_v5 = vmul.f32 %v1707_v60, %v1707_v60  ;;  %v1761_v56 = vmul.f32 %v1447_v2, %v109_v53 }
  0x31   :  { %2836 = vst [vmem:[#allocation16_spill] sm:$0xff] %v1710_v61 }
  0x32   :  { %v252_v17 = vsel %vm176_vm0, %v169_v5, 0.0  ;;  %2842 = vst [vmem:[#allocation22_spill] sm:$0xff] %v1761_v56  ;;  %v175_v57 = vmul.f32 %v1761_v56, %v1761_v56 }
  0x34   :  { %229 = vadd.xlane.f32.xlu2 %v228_v8  ;;  %226 = vadd.xlane.f32.xlu1 %v225_v9  ;;  %v170_v8 = vmul.f32 %v1710_v61, %v1710_v61  ;;  %v106_v9 = vmax.f32 %v74_v62, 0.0 }
  0x35   :  { %223 = vadd.xlane.f32.xlu0 %v222_v13  ;;  %v107_v13 = vmax.f32 %v75_v63, 0.0 }
  0x36   :  { %v255_v18 = vsel %vm176_vm0, %v170_v8, 0.0  ;;  %v1728_v19 = vmul.f32 %v1447_v2, %v106_v9 }
  0x37   :  { %v1731_v20 = vmul.f32 %v1447_v2, %v107_v13 }
  0x38   :  { %2838 = vst [vmem:[#allocation18_spill] sm:$0xff] %v1728_v19  ;;  %v172_v27 = vmul.f32 %v1728_v19, %v1728_v19 }
  0x39   :  { %2839 = vst [vmem:[#allocation19_spill] sm:$0xff] %v1731_v20  ;;  %v173_v31 = vmul.f32 %v1731_v20, %v1731_v20 }
  0x3b   :  { %v264_v38 = vsel %vm176_vm0, %v173_v31, 0.0 }
  0x3c   :  { %238 = vadd.xlane.f32.xlu2 %v237_v36  ;;  %235 = vadd.xlane.f32.xlu1 %v234_v37  ;;  %v171_v36 = vmul.f32 %v1735_v26, %v1735_v26  ;;  %v261_v37 = vsel %vm176_vm0, %v172_v27, 0.0 }
  0x3d   :  { %232 = vadd.xlane.f32.xlu0 %v231_v40  ;;  %v42_v40 = vld [vmem:[%s2796_s0 + $0xf0] sm:$0xff]  ;;  %s1418_s0 = smov [#allocation2]  }
  0x3e   :  { %v258_v39 = vsel %vm176_vm0, %v171_v36, 0.0  ;;  %v76_v42 = vmul.f32 %v1442_v1, %v42_v40  ;;  %s1245_s19 = sshll.u32 %s1418_s0, 4  ;;  %s1246_s19 = int_to_ptr.vmem [resolvable:$true] %s1245_s19 }
  0x40   :  { %v108_v43 = vmax.f32 %v76_v42, 0.0 }
  0x42   :  { %v1751_v44 = vmul.f32 %v1447_v2, %v108_v43 }
  0x44   :  { %244 = vadd.xlane.f32.xlu1 %v243_v58  ;;  %247 = vadd.xlane.f32.xlu2 %v246_v59  ;;  %2841 = vst [vmem:[#allocation21_spill] sm:$0xff] %v1751_v44  ;;  %v174_v45 = vmul.f32 %v1751_v44, %v1751_v44  ;;  %v270_v58 = vsel %vm176_vm0, %v175_v57, 0.0 }
  0x45   :  { %241 = vadd.xlane.f32.xlu0 %v240_v0 }
  0x46   :  { %v267_v49 = vsel %vm176_vm0, %v174_v45, 0.0 }
  0x4c   :  { %253 = vadd.xlane.f32.xlu1 %v252_v17  ;;  %256 = vadd.xlane.f32.xlu2 %v255_v18 }
  0x4d   :  { %250 = vadd.xlane.f32.xlu0 %v249_v25 }
  0x54   :  { %262 = vadd.xlane.f32.xlu1 %v261_v37  ;;  %265 = vadd.xlane.f32.xlu2 %v264_v38 }
  0x55   :  { %259 = vadd.xlane.f32.xlu0 %v258_v39 }
  0x5c   :  { %271 = vadd.xlane.f32.xlu1 %v270_v58 }
  0x5d   :  { %268 = vadd.xlane.f32.xlu0 %v267_v49 }
  0x7f   :  { %v1766_v59 = vpop.xlane.xlu2 %190  ;;  %v1768_v62 = vpop.xlane.xlu1 %184 }
  0x80   :  { %1264 = vrsqrt.f32 %v1766_v59  ;;  %v1771_v63 = vpop.xlane.xlu0 %178  ;;  %vm328_vm1 = vcmp.eq.f32.partialorder %v1766_v59, inf  ;;  %vm330_vm2 = vcmp.eq.f32.partialorder %v1766_v59, 0.0  ;;  %vm304_vm3 = vcmp.eq.f32.partialorder %v1768_v62, inf }
  0x81   :  { %1266 = vrsqrt.f32 %v1768_v62  ;;  %vm306_vm4 = vcmp.eq.f32.partialorder %v1768_v62, 0.0  ;;  %vm280_vm5 = vcmp.eq.f32.partialorder %v1771_v63, inf  ;;  %vm282_vm8 = vcmp.eq.f32.partialorder %v1771_v63, 0.0 }
  0x82   :  { %1268 = vrsqrt.f32 %v1771_v63 }
  0x86   :  { %v1265_v1 = vpop.eup %1264 }
  0x87   :  { %v1267_v2 = vpop.eup %1266  ;;  %v322_v0 = vmul.f32 %v1265_v1, %v1766_v59  ;;  %v1776_v4 = vpop.xlane.xlu2 %193 }
  0x88   :  { %v1778_v5 = vpop.xlane.xlu1 %187  ;;  %v298_v8 = vmul.f32 %v1267_v2, %v1768_v62  ;;  %1270 = vrsqrt.f32 %v1776_v4  ;;  %v1782_v9 = vpop.xlane.xlu0 %181  ;;  %vm340_vm6 = vcmp.eq.f32.partialorder %v1776_v4, inf  ;;  %vm342_vm7 = vcmp.eq.f32.partialorder %v1776_v4, 0.0 }
  0x89   :  { %v323_v13 = vmul.f32 %v1265_v1, %v322_v0  ;;  %1272 = vrsqrt.f32 %v1778_v5  ;;  %v1269_v16 = vpop.eup %1268  ;;  %vm316_vm9 = vcmp.eq.f32.partialorder %v1778_v5, inf  ;;  %vm318_vm10 = vcmp.eq.f32.partialorder %v1778_v5, 0.0 }
  0x8a   :  { %v299_v15 = vmul.f32 %v1267_v2, %v298_v8  ;;  %1274 = vrsqrt.f32 %v1782_v9  ;;  %v274_v27 = vmul.f32 %v1269_v16, %v1771_v63  ;;  %vm292_vm11 = vcmp.eq.f32.partialorder %v1782_v9, inf }
  0x8b   :  { %v324_v17 = vmul.f32 0.5, %v323_v13  ;;  %vm294_vm12 = vcmp.eq.f32.partialorder %v1782_v9, 0.0 }
  0x8c   :  { %v300_v18 = vmul.f32 0.5, %v299_v15  ;;  %v275_v49 = vmul.f32 %v1269_v16, %v274_v27 }
  0x8d   :  { %v325_v36 = vsub.f32 1.5, %v324_v17 }
  0x8e   :  { %v1271_v25 = vpop.eup %1270  ;;  %v301_v39 = vsub.f32 1.5, %v300_v18  ;;  %v276_v17 = vmul.f32 0.5, %v275_v49 }
  0x8f   :  { %v1273_v31 = vpop.eup %1272  ;;  %v334_v37 = vmul.f32 %v1271_v25, %v1776_v4  ;;  %v1788_v38 = vpop.xlane.xlu2 %202  ;;  %v326_v53 = vmul.f32 %v1265_v1, %v325_v36 }
  0x90   :  { %v310_v40 = vmul.f32 %v1273_v31, %v1778_v5  ;;  %1276 = vrsqrt.f32 %v1788_v38  ;;  %v1792_v42 = vpop.xlane.xlu1 %199  ;;  %v1275_v43 = vpop.eup %1274  ;;  %v302_v58 = vmul.f32 %v1267_v2, %v301_v39  ;;  %v331_v39 = vand.u32 2147483648, %v1766_v59 }
  0x91   :  { %v335_v45 = vmul.f32 %v1271_v25, %v334_v37  ;;  %v286_v52 = vmul.f32 %v1275_v43, %v1782_v9  ;;  %1278 = vrsqrt.f32 %v1792_v42  ;;  %v1796_v13 = vpop.xlane.xlu0 %196  ;;  %v327_v18 = vmul.f32 %v326_v53, %v1766_v59 }
  0x92   :  { %v311_v51 = vmul.f32 %v1273_v31, %v310_v40  ;;  %v303_v1 = vmul.f32 %v302_v58, %v1768_v62  ;;  %1280 = vrsqrt.f32 %v1796_v13  ;;  %vm376_vm13 = vcmp.eq.f32.partialorder %v1788_v38, inf }
  0x93   :  { %v336_v57 = vmul.f32 0.5, %v335_v45  ;;  %v287_v8 = vmul.f32 %v1275_v43, %v286_v52  ;;  %v277_v45 = vsub.f32 1.5, %v276_v17  ;;  %v329_v49 = vsel %vm328_vm1, %v1766_v59, %v327_v18 }
  0x94   :  { %v312_v0 = vmul.f32 0.5, %v311_v51  ;;  %v283_v17 = vand.u32 2147483648, %v1771_v63  ;;  %v319_v59 = vand.u32 2147483648, %v1778_v5  ;;  %vm378_vm14 = vcmp.eq.f32.partialorder %v1788_v38, 0.0 }
  0x95   :  { %v337_v56 = vsub.f32 1.5, %v336_v57  ;;  %v288_v44 = vmul.f32 0.5, %v287_v8  ;;  %v305_v57 = vsel %vm304_vm3, %v1768_v62, %v303_v1  ;;  %v278_v18 = vmul.f32 %v1269_v16, %v277_v45 }
  0x96   :  { %v1277_v15 = vpop.eup %1276  ;;  %v313_v36 = vsub.f32 1.5, %v312_v0  ;;  %vm364_vm15 = vcmp.eq.f32.partialorder %v1792_v42, inf  ;;  %vm352_vm0 = vcmp.eq.f32.partialorder %v1796_v13, inf  ;;  %vm354_vm3 = vcmp.eq.f32.partialorder %v1796_v13, 0.0 }
  0x97   :  { %v370_v27 = vmul.f32 %v1277_v15, %v1788_v38  ;;  %v1800_v37 = vpop.xlane.xlu2 %211  ;;  %v1803_v40 = vpop.eup %1278  ;;  %v338_v51 = vmul.f32 %v1271_v25, %v337_v56  ;;  %v289_v52 = vsub.f32 1.5, %v288_v44  ;;  %v343_v44 = vand.u32 2147483648, %v1776_v4 }
  0x98   :  { %v1812_v53 = vpop.xlane.xlu1 %208  ;;  %v314_v58 = vmul.f32 %v1273_v31, %v313_v36  ;;  %v358_v8 = vmul.f32 %v1803_v40, %v1792_v42  ;;  %1282 = vrsqrt.f32 %v1800_v37  ;;  %v1826_v25 = vpop.eup %1280  ;;  %v332_v31 = vsel %vm330_vm2, %v331_v39, %v329_v49 }
  0x99   :  { %v371_v2 = vmul.f32 %v1277_v15, %v370_v27  ;;  %v307_v27 = vand.u32 2147483648, %v1768_v62  ;;  %v1824_v56 = vpop.xlane.xlu0 %205  ;;  %v339_v36 = vmul.f32 %v338_v51, %v1776_v4  ;;  %v346_v19 = vmul.f32 %v1826_v25, %v1796_v13 }
  0x9a   :  { %v315_v16 = vmul.f32 %v314_v58, %v1778_v5  ;;  %v359_v20 = vmul.f32 %v1803_v40, %v358_v8  ;;  %1284 = vrsqrt.f32 %v1812_v53  ;;  %v1844_v62 = vmax.f32 %v332_v31, 1e-12 }
  0x9b   :  { %v372_v0 = vmul.f32 0.5, %v371_v2  ;;  %v308_v1 = vsel %vm306_vm4, %v307_v27, %v305_v57  ;;  %v290_v2 = vmul.f32 %v1275_v43, %v289_v52  ;;  %v279_v43 = vmul.f32 %v278_v18, %v1771_v63 }
  0x9c   :  { %v347_v39 = vmul.f32 %v1826_v25, %v346_v19  ;;  %v1849_v51 = vmax.f32 %v308_v1, 1e-12  ;;  %v341_v52 = vsel %vm340_vm6, %v1776_v4, %v339_v36  ;;  %1286 = vrsqrt.f32 %v1824_v56 }
  0x9d   :  { %v373_v45 = vsub.f32 1.5, %v372_v0  ;;  %v291_v57 = vmul.f32 %v290_v2, %v1782_v9  ;;  %v317_v58 = vsel %vm316_vm9, %v1778_v5, %v315_v16  ;;  %v360_v8 = vmul.f32 0.5, %v359_v20 }
  0x9e   :  { %v1283_v49 = vpop.eup %1282  ;;  %v295_v19 = vand.u32 2147483648, %v1782_v9  ;;  %v348_v18 = vmul.f32 0.5, %v347_v39  ;;  %v281_v1 = vsel %vm280_vm5, %v1771_v63, %v279_v43  ;;  %v344_v36 = vsel %vm342_vm7, %v343_v44, %v341_v52 }
  0x9f   :  { %v1838_v26 = vpop.xlane.xlu2 %220  ;;  %v374_v0 = vmul.f32 %v1277_v15, %v373_v45  ;;  %v406_v27 = vmul.f32 %v1283_v49, %v1800_v37  ;;  %v320_v2 = vsel %vm318_vm10, %v319_v59, %v317_v58  ;;  %v293_v16 = vsel %vm292_vm11, %v1782_v9, %v291_v57 }
  0xa0   :  { %1288 = vrsqrt.f32 %v1838_v26  ;;  %v1861_v31 = vpop.xlane.xlu1 %217  ;;  %v1285_v15 = vpop.eup %1284  ;;  %v361_v43 = vsub.f32 1.5, %v360_v8  ;;  %v1883_v4 = vsel %vm282_vm8, %v283_v17, %v281_v1  ;;  %v379_v5 = vand.u32 2147483648, %v1788_v38 }
  0xa1   :  { %1290 = vrcp.f32 %v1844_v62  ;;  %v407_v20 = vmul.f32 %v1283_v49, %v406_v27  ;;  %v375_v45 = vmul.f32 %v374_v0, %v1788_v38  ;;  %v394_v27 = vmul.f32 %v1285_v15, %v1812_v53  ;;  %v1879_v61 = vpop.xlane.xlu0 %214 }
  0xa2   :  { %1292 = vrcp.f32 %v1849_v51  ;;  %v1287_v55 = vpop.eup %1286  ;;  %v349_v44 = vsub.f32 1.5, %v348_v18  ;;  %v1887_v59 = vmax.f32 %v344_v36, 1e-12  ;;  %v296_v63 = vsel %vm294_vm12, %v295_v19, %v293_v16 }
  0xa3   :  { %v408_v39 = vmul.f32 0.5, %v407_v20  ;;  %1294 = vrsqrt.f32 %v1861_v31  ;;  %v395_v58 = vmul.f32 %v1285_v15, %v394_v27  ;;  %v1892_v20 = vmax.f32 %v320_v2, 1e-12 }
  0xa4   :  { %v382_v17 = vmul.f32 %v1287_v55, %v1824_v56  ;;  %1296 = vrsqrt.f32 %v1879_v61  ;;  %v377_v1 = vsel %vm376_vm13, %v1788_v38, %v375_v45  ;;  %v362_v36 = vmul.f32 %v1803_v40, %v361_v43 }
  0xa5   :  { %v409_v57 = vsub.f32 1.5, %v408_v39  ;;  %v396_v2 = vmul.f32 0.5, %v395_v58  ;;  %v350_v16 = vmul.f32 %v1826_v25, %v349_v44  ;;  %v1914_v58 = vmax.f32 %v296_v63, 1e-12 }
  0xa6   :  { %v1289_v8 = vpop.eup %1288  ;;  %v383_v27 = vmul.f32 %v1287_v55, %v382_v17  ;;  %vm412_vm1 = vcmp.eq.f32.partialorder %v1800_v37, inf  ;;  %v380_v25 = vsel %vm378_vm14, %v379_v5, %v377_v1  ;;  %vm366_vm2 = vcmp.eq.f32.partialorder %v1792_v42, 0.0 }
  0xa7   :  { %v1890_v0 = vpop.xlane.xlu2 %229  ;;  %v1898_v18 = vpop.eup %1290  ;;  %v442_v9 = vmul.f32 %v1289_v8, %v1838_v26  ;;  %v410_v39 = vmul.f32 %v1283_v49, %v409_v57  ;;  %v397_v40 = vsub.f32 1.5, %v396_v2  ;;  %v363_v49 = vmul.f32 %v362_v36, %v1792_v42 }
  0xa8   :  { %v1907_v19 = vpop.eup %1292  ;;  %1298 = vrsqrt.f32 %v1890_v0  ;;  %v384_v60 = vmul.f32 0.5, %v383_v27  ;;  %v1917_v23 = vpop.xlane.xlu1 %226  ;;  %v415_v44 = vand.u32 2147483648, %v1800_v37  ;;  %v351_v2 = vmul.f32 %v350_v16, %v1796_v13 }
  0xa9   :  { %1300 = vrcp.f32 %v1887_v59  ;;  %v443_v43 = vmul.f32 %v1289_v8, %v442_v9  ;;  %v1295_v52 = vpop.eup %1294  ;;  %v411_v63 = vmul.f32 %v410_v39, %v1800_v37  ;;  %vm414_vm4 = vcmp.eq.f32.partialorder %v1800_v37, 0.0 }
  0xaa   :  { %1302 = vrcp.f32 %v1892_v20  ;;  %v1297_v17 = vpop.eup %1296  ;;  %vm400_vm5 = vcmp.eq.f32.partialorder %v1812_v53, inf  ;;  %v385_v38 = vsub.f32 1.5, %v384_v60  ;;  %v430_v5 = vmul.f32 %v1295_v52, %v1861_v31 }
  0xab   :  { %v444_v57 = vmul.f32 0.5, %v443_v43  ;;  %v398_v1 = vmul.f32 %v1285_v15, %v397_v40  ;;  %v418_v9 = vmul.f32 %v1297_v17, %v1879_v61  ;;  %1304 = vrsqrt.f32 %v1917_v23  ;;  %v1942_v40 = vpop.xlane.xlu0 %223 }
  0xac   :  { %1306 = vrcp.f32 %v1914_v58  ;;  %v403_v16 = vand.u32 2147483648, %v1812_v53  ;;  %v386_v39 = vmul.f32 %v1287_v55, %v385_v38  ;;  %v431_v43 = vmul.f32 %v1295_v52, %v430_v5 }
  0xad   :  { %v445_v36 = vsub.f32 1.5, %v444_v57  ;;  %v1938_v3 = vmax.f32 %v380_v25, 1e-12  ;;  %vm402_vm6 = vcmp.eq.f32.partialorder %v1812_v53, 0.0  ;;  %vm388_vm7 = vcmp.eq.f32.partialorder %v1824_v56, inf }
  0xae   :  { %v1932_v27 = vpop.eup %1298  ;;  %v419_v15 = vmul.f32 %v1297_v17, %v418_v9  ;;  %v365_v28 = vsel %vm364_vm15, %v1792_v42, %v363_v49  ;;  %v353_v55 = vsel %vm352_vm0, %v1796_v13, %v351_v2  ;;  %vm390_vm8 = vcmp.eq.f32.partialorder %v1824_v56, 0.0 }
  0xaf   :  { %v1936_v45 = vpop.eup %1300  ;;  %v446_v60 = vmul.f32 %v1289_v8, %v445_v36  ;;  %v432_v25 = vmul.f32 0.5, %v431_v43  ;;  %v478_v38 = vmul.f32 %v1932_v27, %v1890_v0  ;;  %v413_v8 = vsel %vm412_vm1, %v1800_v37, %v411_v63 }
  0xb0   :  { %v1944_v57 = vpop.eup %1302  ;;  %v399_v5 = vmul.f32 %v398_v1, %v1812_v53  ;;  %v387_v36 = vmul.f32 %v386_v39, %v1824_v56  ;;  %v420_v9 = vmul.f32 0.5, %v419_v15  ;;  %1308 = vrsqrt.f32 %v1942_v40 }
  0xb1   :  { %v447_v49 = vmul.f32 %v446_v60, %v1838_v26  ;;  %v433_v35 = vsub.f32 1.5, %v432_v25  ;;  %v479_v2 = vmul.f32 %v1932_v27, %v478_v38  ;;  %v1963_v43 = vpop.eup %1304  ;;  %1310 = vrcp.f32 %v1938_v3 }
  0xb2   :  { %v391_v34 = vand.u32 2147483648, %v1824_v56  ;;  %vm448_vm9 = vcmp.eq.f32.partialorder %v1838_v26, inf  ;;  %v421_v63 = vsub.f32 1.5, %v420_v9  ;;  %v1968_v1 = vpop.eup %1306  ;;  %v2843_v39 = vand.u32 2147483648, %v1792_v42  ;;  %v1988_v42 = vpop.xlane.xlu2 %238 }
  0xb3   :  { %vm450_vm10 = vcmp.eq.f32.partialorder %v1838_v26, 0.0  ;;  %v451_v15 = vand.u32 2147483648, %v1838_v26  ;;  %v434_v25 = vmul.f32 %v1295_v52, %v433_v35  ;;  %v2844_v38 = vand.u32 2147483648, %v1796_v13 }
  0xb4   :  { %v368_v60 = vsel %vm366_vm2, %v2843_v39, %v365_v28  ;;  %v416_v9 = vsel %vm414_vm4, %v415_v44, %v413_v8  ;;  %v401_v6 = vsel %vm400_vm5, %v1812_v53, %v399_v5  ;;  %v389_v28 = vsel %vm388_vm7, %v1824_v56, %v387_v36 }
  0xb5   :  { %v356_v33 = vsel %vm354_vm3, %v2844_v38, %v353_v55  ;;  %v449_v35 = vsel %vm448_vm9, %v1838_v26, %v447_v49  ;;  %v422_v52 = vmul.f32 %v1297_v17, %v421_v63  ;;  %v480_v39 = vmul.f32 0.5, %v479_v2 }
  0xb6   :  { %v466_v13 = vmul.f32 %v1963_v43, %v1917_v23  ;;  %v1993_v55 = vmax.f32 %v368_v60, 1e-12  ;;  %v435_v37 = vmul.f32 %v434_v25, %v1861_v31  ;;  %vm436_vm11 = vcmp.eq.f32.partialorder %v1861_v31, inf  ;;  %v1309_v44 = vpop.eup %1308 }
  0xb7   :  { %vm438_vm12 = vcmp.eq.f32.partialorder %v1861_v31, 0.0  ;;  %v1998_v8 = vmax.f32 %v356_v33, 1e-12  ;;  %v404_v5 = vsel %vm402_vm6, %v403_v16, %v401_v6  ;;  %v2003_v17 = vmax.f32 %v1883_v4, 1e-12  ;;  %v2006_v36 = vpop.eup %1310  ;;  %v2018_v16 = vpop.xlane.xlu1 %235 }
  0xb8   :  { %1312 = vrsqrt.f32 %v1988_v42  ;;  %v2008_v49 = vmax.f32 %v416_v9, 1e-12  ;;  %v392_v2 = vsel %vm390_vm8, %v391_v34, %v389_v28  ;;  %v452_v63 = vsel %vm450_vm10, %v451_v15, %v449_v35 }
  0xb9   :  { %v454_v33 = vmul.f32 %v1309_v44, %v1942_v40  ;;  %v423_v53 = vmul.f32 %v422_v52, %v1879_v61  ;;  %v481_v6 = vsub.f32 1.5, %v480_v39  ;;  %v467_v4 = vmul.f32 %v1963_v43, %v466_v13 }
  0xba   :  { %2845 = vst [vmem:[#allocation23_spill] sm:$0xff] %v2008_v49  ;;  %1314 = vrcp.f32 %v2003_v17  ;;  %v2021_v60 = vmax.f32 %v404_v5, 1e-12  ;;  %v437_v34 = vsel %vm436_vm11, %v1861_v31, %v435_v37  ;;  %v2027_v56 = vmax.f32 %v392_v2, 1e-12  ;;  %v2046_v5 = vpop.xlane.xlu0 %232 }
  0xbb   :  { %1316 = vrcp.f32 %v1993_v55  ;;  %v455_v26 = vmul.f32 %v1309_v44, %v454_v33  ;;  %v439_v15 = vand.u32 2147483648, %v1861_v31  ;;  %vm424_vm13 = vcmp.eq.f32.partialorder %v1879_v61, inf }
  0xbc   :  { %1318 = vrcp.f32 %v1998_v8  ;;  %v2032_v25 = vmax.f32 %v452_v63, 1e-12  ;;  %vm426_vm14 = vcmp.eq.f32.partialorder %v1879_v61, 0.0  ;;  %v425_v35 = vsel %vm424_vm13, %v1879_v61, %v423_v53 }
  0xbd   :  { %1320 = vrcp.f32 %v2008_v49  ;;  %v456_v38 = vmul.f32 0.5, %v455_v26  ;;  %v440_v28 = vsel %vm438_vm12, %v439_v15, %v437_v34  ;;  %v482_v52 = vmul.f32 %v1932_v27, %v481_v6 }
  0xbe   :  { %2846 = vst [vmem:[#allocation24_spill] sm:$0xff] %v2032_v25  ;;  %v2035_v9 = vpop.eup %1312  ;;  %v468_v39 = vmul.f32 0.5, %v467_v4  ;;  %1322 = vrcp.f32 %v2021_v60  ;;  %v427_v13 = vand.u32 2147483648, %v1879_v61  ;;  %vm484_vm15 = vcmp.eq.f32.partialorder %v1890_v0, inf }
  0xbf   :  { %v514_v37 = vmul.f32 %v2035_v9, %v1988_v42  ;;  %1324 = vrcp.f32 %v2027_v56  ;;  %v487_v31 = vand.u32 2147483648, %v1890_v0  ;;  %v457_v27 = vsub.f32 1.5, %v456_v38 }
  0xc0   :  { %v1315_v2 = vpop.eup %1314  ;;  %1326 = vrcp.f32 %v2032_v25  ;;  %v2054_v53 = vmax.f32 %v440_v28, 1e-12  ;;  %v428_v6 = vsel %vm426_vm14, %v427_v13, %v425_v35  ;;  %v483_v26 = vmul.f32 %v482_v52, %v1890_v0 }
  0xc1   :  { %v2051_v33 = vpop.eup %1316  ;;  %v690_v4 = vmul.f32 %v1315_v2, %v2003_v17  ;;  %vm486_vm0 = vcmp.eq.f32.partialorder %v1890_v0, 0.0  ;;  %v469_v15 = vsub.f32 1.5, %v468_v39  ;;  %v515_v38 = vmul.f32 %v2035_v9, %v514_v37  ;;  %v2076_v37 = vpop.xlane.xlu1 %244 }
  0xc2   :  { %2847 = vst [vmem:[#allocation25_spill] sm:$0xff] %v2054_v53  ;;  %v2059_v34 = vpop.eup %1318  ;;  %1328 = vrsqrt.f32 %v2018_v16  ;;  %v698_v25 = vand.u32 2147483647, %v2003_v17  ;;  %v700_v61 = vand.u32 2147483648, %v2003_v17  ;;  %v2070_v35 = vmax.f32 %v428_v6, 1e-12 }
  0xc3   :  { %v2065_v63 = vpop.eup %1320  ;;  %v691_v28 = vsub.f32 1.0, %v690_v4  ;;  %1330 = vrsqrt.f32 %v2046_v5  ;;  %v458_v13 = vmul.f32 %v1309_v44, %v457_v27  ;;  %vm460_vm1 = vcmp.eq.f32.partialorder %v1942_v40, inf }
  0xc4   :  { %2848 = vst [vmem:[#allocation26_spill] sm:$0xff] %v2065_v63  ;;  %v705_v39 = vmul.f32 %v1968_v1, %v1914_v58  ;;  %v2078_v41 = vpop.eup %1322  ;;  %vm694_vm2 = vweird.f32 %v2003_v17  ;;  %vm695_vm3 = vweird.f32 %v1315_v2  ;;  %v516_v63 = vmul.f32 0.5, %v515_v38 }
  0xc5   :  { %v692_v4 = vmul.f32 %v1315_v2, %v691_v28  ;;  %v2081_v49 = vpop.eup %1324  ;;  %1332 = vrcp.f32 %v2054_v53  ;;  %v485_v44 = vsel %vm484_vm15, %v1890_v0, %v483_v26  ;;  %v470_v27 = vmul.f32 %v1963_v43, %v469_v15  ;;  %vm696_vm7 = vmor %vm694_vm2, %vm695_vm3 }
  0xc6   :  { %v706_v6 = vsub.f32 1.0, %v705_v39  ;;  %v2088_v52 = vpop.eup %1326  ;;  %vm472_vm4 = vcmp.eq.f32.partialorder %v1917_v23, inf  ;;  %vm462_vm5 = vcmp.eq.f32.partialorder %v1942_v40, 0.0  ;;  %vm699_vm6 = vcmp.eq.f32.partialorder %v698_v25, 8.507059e+37 }
  0xc7   :  { %2849 = vst [vmem:[#allocation27_spill] sm:$0xff] %v2088_v52  ;;  %v693_v28 = vadd.f32 %v1315_v2, %v692_v4  ;;  %v701_v38 = vor.u32 1.1754944e-38, %v700_v61  ;;  %1334 = vrsqrt.f32 %v2076_v37  ;;  %v459_v53 = vmul.f32 %v458_v13, %v1942_v40  ;;  %v2104_v52 = vpop.xlane.xlu0 %241 }
  0xc8   :  { %v1329_v7 = vpop.eup %1328  ;;  %v707_v43 = vmul.f32 %v1968_v1, %v706_v6  ;;  %vm710_vm8 = vweird.f32 %v1968_v1  ;;  %v715_v26 = vand.u32 2147483648, %v1914_v58  ;;  %v517_v25 = vsub.f32 1.5, %v516_v63 }
  0xc9   :  { %v2100_v15 = vpop.eup %1330  ;;  %v697_v39 = vsel %vm696_vm7, %v1315_v2, %v693_v28  ;;  %v502_v61 = vmul.f32 %v1329_v7, %v2018_v16  ;;  %v713_v4 = vand.u32 2147483647, %v1914_v58  ;;  %vm709_vm9 = vweird.f32 %v1914_v58 }
  0xca   :  { %v702_v13 = vsel %vm699_vm6, %v701_v38, %v697_v39  ;;  %v490_v17 = vmul.f32 %v2100_v15, %v2046_v5  ;;  %v708_v6 = vadd.f32 %v1968_v1, %v707_v43  ;;  %v488_v11 = vsel %vm486_vm0, %v487_v31, %v485_v44  ;;  %vm711_vm11 = vmor %vm709_vm9, %vm710_vm8 }
  0xcb   :  { %v471_v2 = vmul.f32 %v470_v27, %v1917_v23  ;;  %vm474_vm10 = vcmp.eq.f32.partialorder %v1917_v23, 0.0  ;;  %v703_v63 = vmul.f32 %v702_v13, %v1483_v24  ;;  %v503_v28 = vmul.f32 %v1329_v7, %v502_v61  ;;  %v2117_v38 = vpop.eup %1332 }
  0xcc   :  { %v491_v39 = vmul.f32 %v2100_v15, %v490_v17  ;;  %v712_v43 = vsel %vm711_vm11, %v1968_v1, %v708_v6  ;;  %v716_v58 = vor.u32 1.1754944e-38, %v715_v26  ;;  %1336 = vrsqrt.f32 %v2104_v52  ;;  %v2136_v17 = vpop.xlane.xlu2 %247 }
  0xcd   :  { %v2122_v0 = vpop.eup %1334  ;;  %v461_v31 = vsel %vm460_vm1, %v1942_v40, %v459_v53  ;;  %1169 = vxpose.xlu2.b32.start [1/16] (narrow) %v703_v63, 32  ;;  %v518_v24 = vmul.f32 %v2035_v9, %v517_v25  ;;  %v504_v44 = vmul.f32 0.5, %v503_v28  ;;  %vm714_vm12 = vcmp.eq.f32.partialorder %v713_v4, 8.507059e+37 }
  0xce   :  { %1338 = vrcp.f32 %v2070_v35  ;;  %v492_v27 = vmul.f32 0.5, %v491_v39  ;;  %v717_v61 = vsel %vm714_vm12, %v716_v58, %v712_v43  ;;  %v538_v1 = vmul.f32 %v2122_v0, %v2076_v37 }
  0xcf   :  { %v2131_v26 = vmax.f32 %v488_v11, 1e-12  ;;  %vm520_vm13 = vcmp.eq.f32.partialorder %v1988_v42, inf  ;;  %v505_v13 = vsub.f32 1.5, %v504_v44  ;;  %v720_v53 = vmul.f32 %v1907_v19, %v1849_v51 }
  0xd0   :  { %v473_v9 = vsel %vm472_vm4, %v1917_v23, %v471_v2  ;;  %v2850_v25 = vand.u32 2147483648, %v1942_v40  ;;  %vm522_vm14 = vcmp.eq.f32.partialorder %v1988_v42, 0.0  ;;  %v539_v11 = vmul.f32 %v2122_v0, %v538_v1 }
  0xd1   :  { %v519_v6 = vmul.f32 %v518_v24, %v1988_v42  ;;  %v493_v63 = vsub.f32 1.5, %v492_v27  ;;  %v718_v28 = vmul.f32 %v717_v61, %v1500_v32  ;;  %v721_v39 = vsub.f32 1.0, %v720_v53 }
  0xd2   :  { %v464_v4 = vsel %vm462_vm5, %v2850_v25, %v461_v31  ;;  %v2149_v43 = vpop.eup %1336  ;;  %v506_v58 = vmul.f32 %v1329_v7, %v505_v13  ;;  %v540_v44 = vmul.f32 0.5, %v539_v11  ;;  %v730_v2 = vand.u32 2147483648, %v1849_v51 }
  0xd3   :  { %1340 = vrsqrt.f32 %v2136_v17  ;;  %v526_v40 = vmul.f32 %v2149_v43, %v2104_v52  ;;  %v722_v31 = vmul.f32 %v1907_v19, %v721_v39  ;;  %vm725_vm15 = vweird.f32 %v1907_v19 }
  0xd4   :  { %v728_v24 = vand.u32 2147483647, %v1849_v51  ;;  %v2158_v27 = vpop.eup %1338  ;;  %1342 = vrcp.f32 %v2131_v26  ;;  %v2851_v32 = vand.u32 2147483648, %v1917_v23  ;;  %v523_v61 = vand.u32 2147483648, %v1988_v42 }
  0xd5   :  { %vm508_vm0 = vcmp.eq.f32.partialorder %v2018_v16, inf  ;;  %v2169_v1 = vmax.f32 %v464_v4, 1e-12  ;;  %1170 = vxpose.xlu2.b32.cont [2/16] (narrow) %v718_v28, 32  ;;  %v527_v13 = vmul.f32 %v2149_v43, %v526_v40  ;;  %v723_v53 = vadd.f32 %v1907_v19, %v722_v31 }
  0xd6   :  { %v2165_v7 = vsel %vm474_vm10, %v2851_v32, %v473_v9  ;;  %vm724_vm1 = vweird.f32 %v1849_v51  ;;  %v521_v25 = vsel %vm520_vm13, %v1988_v42, %v519_v6  ;;  %vm510_vm2 = vcmp.eq.f32.partialorder %v2018_v16, 0.0  ;;  %v2201_v32 = vpop.xlane.xlu0 %250 }
  0xd7   :  { %v494_v23 = vmul.f32 %v2100_v15, %v493_v63  ;;  %v541_v9 = vsub.f32 1.5, %v540_v44  ;;  %vm726_vm3 = vmor %vm724_vm1, %vm725_vm15  ;;  %v731_v4 = vor.u32 1.1754944e-38, %v730_v2  ;;  %v507_v11 = vmul.f32 %v506_v58, %v2018_v16 }
  0xd8   :  { %v528_v28 = vmul.f32 0.5, %v527_v13  ;;  %v727_v39 = vsel %vm726_vm3, %v1907_v19, %v723_v53  ;;  %vm729_vm4 = vcmp.eq.f32.partialorder %v728_v24, 8.507059e+37  ;;  %v511_v40 = vand.u32 2147483648, %v2018_v16 }
  0xd9   :  { %v2183_v51 = vpop.eup %1340  ;;  %vm496_vm5 = vcmp.eq.f32.partialorder %v2046_v5, inf  ;;  %v732_v6 = vsel %vm729_vm4, %v731_v4, %v727_v39  ;;  %v735_v15 = vmul.f32 %v1944_v57, %v1892_v20  ;;  %1344 = vrcp.f32 %v2169_v1 }
  0xda   :  { %v499_v63 = vand.u32 2147483648, %v2046_v5  ;;  %vm544_vm6 = vcmp.eq.f32.partialorder %v2076_v37, inf  ;;  %v550_v19 = vmul.f32 %v2183_v51, %v2136_v17  ;;  %v2194_v58 = vpop.eup %1342  ;;  %v524_v44 = vsel %vm522_vm14, %v523_v61, %v521_v25 }
  0xdb   :  { %v495_v2 = vmul.f32 %v494_v23, %v2046_v5  ;;  %vm498_vm7 = vcmp.eq.f32.partialorder %v2046_v5, 0.0  ;;  %v542_v31 = vmul.f32 %v2122_v0, %v541_v9  ;;  %v736_v24 = vsub.f32 1.0, %v735_v15 }
  0xdc   :  { %v509_v13 = vsel %vm508_vm0, %v2018_v16, %v507_v11  ;;  %v529_v53 = vsub.f32 1.5, %v528_v28  ;;  %v733_v4 = vmul.f32 %v732_v6, %v1480_v22  ;;  %v551_v39 = vmul.f32 %v2183_v51, %v550_v19 }
  0xdd   :  { %v737_v42 = vmul.f32 %v1944_v57, %v736_v24  ;;  %vm740_vm8 = vweird.f32 %v1944_v57  ;;  %v743_v61 = vand.u32 2147483647, %v1892_v20  ;;  %v745_v0 = vand.u32 2147483648, %v1892_v20 }
  0xde   :  { %v2212_v25 = vmax.f32 %v524_v44, 1e-12  ;;  %vm546_vm9 = vcmp.eq.f32.partialorder %v2076_v37, 0.0  ;;  %v547_v23 = vand.u32 2147483648, %v2076_v37  ;;  %1171 = vxpose.xlu2.b32.cont [3/16] (narrow) %v733_v4, 32  ;;  %1346 = vrsqrt.f32 %v2201_v32 }
  0xdf   :  { %v543_v22 = vmul.f32 %v542_v31, %v2076_v37  ;;  %v552_v9 = vmul.f32 0.5, %v551_v39  ;;  %v738_v11 = vadd.f32 %v1944_v57, %v737_v42  ;;  %vm739_vm10 = vweird.f32 %v1892_v20  ;;  %v2220_v28 = vpop.eup %1344 }
  0xe0   :  { %v512_v6 = vsel %vm510_vm2, %v511_v40, %v509_v13  ;;  %v530_v15 = vmul.f32 %v2149_v43, %v529_v53  ;;  %vm532_vm11 = vcmp.eq.f32.partialorder %v2104_v52, inf  ;;  %vm741_vm12 = vmor %vm739_vm10, %vm740_vm8  ;;  %v746_v19 = vor.u32 1.1754944e-38, %v745_v0 }
  0xe1   :  { %v497_v44 = vsel %vm496_vm5, %v2046_v5, %v495_v2  ;;  %v742_v31 = vsel %vm741_vm12, %v1944_v57, %v738_v11  ;;  %vm744_vm13 = vcmp.eq.f32.partialorder %v743_v61, 8.507059e+37  ;;  %v750_v20 = vmul.f32 %v1898_v18, %v1844_v62  ;;  %v2242_v57 = vpop.xlane.xlu1 %253 }
  0xe2   :  { %1348 = vrcp.f32 %v2212_v25  ;;  %vm534_vm14 = vcmp.eq.f32.partialorder %v2104_v52, 0.0  ;;  %v535_v16 = vand.u32 2147483648, %v2104_v52  ;;  %v747_v43 = vsel %vm744_vm13, %v746_v19, %v742_v31  ;;  %v2281_v31 = vpop.xlane.xlu2 %256 }
  0xe3   :  { %v2237_v40 = vmax.f32 %v512_v6, 1e-12  ;;  %v545_v24 = vsel %vm544_vm6, %v2076_v37, %v543_v22  ;;  %v553_v2 = vsub.f32 1.5, %v552_v9  ;;  %v751_v13 = vsub.f32 1.0, %v750_v20 }
  0xe4   :  { %v2244_v53 = vpop.eup %1346  ;;  %v500_v4 = vsel %vm498_vm7, %v499_v63, %v497_v44  ;;  %v531_v39 = vmul.f32 %v530_v15, %v2104_v52  ;;  %vm556_vm15 = vcmp.eq.f32.partialorder %v2136_v17, inf  ;;  %v748_v42 = vmul.f32 %v747_v43, %v1495_v30 }
  0xe5   :  { %v760_v61 = vand.u32 2147483648, %v1844_v62  ;;  %v562_v0 = vmul.f32 %v2244_v53, %v2201_v32  ;;  %v752_v22 = vmul.f32 %v1898_v18, %v751_v13  ;;  %vm755_vm0 = vweird.f32 %v1898_v18 }
  0xe6   :  { %v758_v9 = vand.u32 2147483647, %v1844_v62  ;;  %v548_v5 = vsel %vm546_vm9, %v547_v23, %v545_v24  ;;  %1172 = vxpose.xlu2.b32.cont [4/16] (narrow) %v748_v42, 32  ;;  %vm754_vm1 = vweird.f32 %v1844_v62  ;;  %1350 = vrsqrt.f32 %v2242_v57 }
  0xe7   :  { %v2262_v30 = vmax.f32 %v2165_v7, 1e-12  ;;  %v554_v63 = vmul.f32 %v2183_v51, %v553_v2  ;;  %vm558_vm2 = vcmp.eq.f32.partialorder %v2136_v17, 0.0  ;;  %v563_v11 = vmul.f32 %v2244_v53, %v562_v0  ;;  %vm756_vm3 = vmor %vm754_vm1, %vm755_vm0 }
  0xe8   :  { %v753_v6 = vadd.f32 %v1898_v18, %v752_v22  ;;  %v765_v37 = vmul.f32 %v1936_v45, %v1887_v59  ;;  %v2270_v23 = vpop.eup %1348  ;;  %v2272_v15 = vmax.f32 %v500_v4, 1e-12  ;;  %v533_v62 = vsel %vm532_vm11, %v2104_v52, %v531_v39 }
  0xe9   :  { %v761_v7 = vor.u32 1.1754944e-38, %v760_v61  ;;  %1352 = vrcp.f32 %v2262_v30  ;;  %v564_v51 = vmul.f32 0.5, %v563_v11  ;;  %vm759_vm4 = vcmp.eq.f32.partialorder %v758_v9, 8.507059e+37 }
  0xea   :  { %v757_v19 = vsel %vm756_vm3, %v1898_v18, %v753_v6  ;;  %v766_v44 = vsub.f32 1.0, %v765_v37  ;;  %1354 = vrcp.f32 %v2237_v40  ;;  %v2284_v20 = vmax.f32 %v548_v5, 1e-12 }
  0xeb   :  { %v559_v43 = vand.u32 2147483648, %v2136_v17  ;;  %v762_v24 = vsel %vm759_vm4, %v761_v7, %v757_v19  ;;  %v536_v2 = vsel %vm534_vm14, %v535_v16, %v533_v62  ;;  %v555_v13 = vmul.f32 %v554_v63, %v2136_v17 }
  0xec   :  { %v763_v4 = vmul.f32 %v762_v24, %v1477_v21  ;;  %v767_v18 = vmul.f32 %v1936_v45, %v766_v44  ;;  %v2292_v39 = vpop.eup %1350  ;;  %vm770_vm5 = vweird.f32 %v1936_v45  ;;  %v773_v42 = vand.u32 2147483647, %v1887_v59 }
  0xed   :  { %v775_v61 = vand.u32 2147483648, %v1887_v59  ;;  %1356 = vrsqrt.f32 %v2281_v31  ;;  %v565_v52 = vsub.f32 1.5, %v564_v51  ;;  %v574_v16 = vmul.f32 %v2292_v39, %v2242_v57 }
  0xee   :  { %1358 = vrcp.f32 %v2272_v15  ;;  %v768_v21 = vadd.f32 %v1936_v45, %v767_v18  ;;  %v2303_v22 = vmax.f32 %v536_v2, 1e-12  ;;  %vm568_vm6 = vcmp.eq.f32.partialorder %v2201_v32, inf  ;;  %1173 = vxpose.xlu2.b32.cont [5/16] (narrow) %v763_v4, 32 }
  0xef   :  { %v1353_v0 = vpop.eup %1352  ;;  %1360 = vrcp.f32 %v2284_v20  ;;  %vm769_vm7 = vweird.f32 %v1887_v59  ;;  %v557_v9 = vsel %vm556_vm15, %v2136_v17, %v555_v13  ;;  %v938_v63 = vand.u32 2147483647, %v2262_v30 }
  0xf0   :  { %v930_v5 = vmul.f32 %v1353_v0, %v2262_v30  ;;  %vm771_vm8 = vmor %vm769_vm7, %vm770_vm5  ;;  %v776_v11 = vor.u32 1.1754944e-38, %v775_v61  ;;  %v2314_v6 = vpop.eup %1354  ;;  %v575_v37 = vmul.f32 %v2292_v39, %v574_v16  ;;  %vm774_vm9 = vcmp.eq.f32.partialorder %v773_v42, 8.507059e+37 }
  0xf1   :  { %v772_v62 = vsel %vm771_vm8, %v1936_v45, %v768_v21  ;;  %v945_v59 = vmul.f32 %v2194_v58, %v2131_v26  ;;  %v566_v7 = vmul.f32 %v2244_v53, %v565_v52  ;;  %vm570_vm10 = vcmp.eq.f32.partialorder %v2201_v32, 0.0 }
  0xf2   :  { %v931_v51 = vsub.f32 1.0, %v930_v5  ;;  %v940_v19 = vand.u32 2147483648, %v2262_v30  ;;  %v777_v44 = vsel %vm774_vm9, %v776_v11, %v772_v62  ;;  %1362 = vrcp.f32 %v2303_v22 }
  0xf3   :  { %v2323_v24 = vpop.eup %1356  ;;  %v560_v2 = vsel %vm558_vm2, %v559_v43, %v557_v9  ;;  %v571_v45 = vand.u32 2147483648, %v2201_v32  ;;  %v946_v13 = vsub.f32 1.0, %v945_v59  ;;  %vm934_vm11 = vweird.f32 %v2262_v30 }
  0xf4   :  { %v2329_v4 = vpop.eup %1358  ;;  %v932_v18 = vmul.f32 %v1353_v0, %v931_v51  ;;  %vm935_vm12 = vweird.f32 %v1353_v0  ;;  %v586_v53 = vmul.f32 %v2323_v24, %v2281_v31  ;;  %v576_v61 = vmul.f32 0.5, %v575_v37 }
  0xf5   :  { %v2334_v42 = vpop.eup %1360  ;;  %v778_v52 = vmul.f32 %v777_v44, %v1492_v29  ;;  %v947_v17 = vmul.f32 %v2194_v58, %v946_v13  ;;  %v780_v43 = vmul.f32 %v2059_v34, %v1998_v8  ;;  %v567_v16 = vmul.f32 %v566_v7, %v2201_v32  ;;  %vm936_vm14 = vmor %vm934_vm11, %vm935_vm12 }
  0xf6   :  { %v933_v21 = vadd.f32 %v1353_v0, %v932_v18  ;;  %vm939_vm13 = vcmp.eq.f32.partialorder %v938_v63, 8.507059e+37  ;;  %v941_v9 = vor.u32 1.1754944e-38, %v940_v19  ;;  %v587_v30 = vmul.f32 %v2323_v24, %v586_v53  ;;  %v2351_v19 = vpop.xlane.xlu0 %259 }
  0xf7   :  { %1174 = vxpose.xlu2.b32.cont [6/16] (narrow) %v778_v52, 32  ;;  %v948_v5 = vadd.f32 %v2194_v58, %v947_v17  ;;  %vm950_vm15 = vweird.f32 %v2194_v58  ;;  %v781_v11 = vsub.f32 1.0, %v780_v43  ;;  %vm949_vm0 = vweird.f32 %v2131_v26 }
  0xf8   :  { %v937_v29 = vsel %vm936_vm14, %v1353_v0, %v933_v21  ;;  %v953_v37 = vand.u32 2147483647, %v2131_v26  ;;  %v955_v62 = vand.u32 2147483648, %v2131_v26  ;;  %v2347_v59 = vpop.eup %1362  ;;  %v577_v63 = vsub.f32 1.5, %v576_v61  ;;  %vm2361_vm2 = vmor %vm949_vm0, %vm950_vm15 }
  0xf9   :  { %v942_v7 = vsel %vm939_vm13, %v941_v9, %v937_v29  ;;  %v782_v51 = vmul.f32 %v2059_v34, %v781_v11  ;;  %vm785_vm1 = vweird.f32 %v2059_v34  ;;  %v2353_v44 = vmax.f32 %v560_v2, 1e-12 }
  0xfa   :  { %v569_v0 = vsel %vm568_vm6, %v2201_v32, %v567_v16  ;;  %v943_v13 = vmul.f32 %v942_v7, %v1620_v50  ;;  %vm784_vm3 = vweird.f32 %v1998_v8  ;;  %v588_v18 = vmul.f32 0.5, %v587_v30 }
  0xfb   :  { %v952_v2 = vsel %vm2361_vm2, %v2194_v58, %v948_v5  ;;  %v783_v53 = vadd.f32 %v2059_v34, %v782_v51  ;;  %v788_v61 = vand.u32 2147483647, %v1998_v8  ;;  %v956_v52 = vor.u32 1.1754944e-38, %v955_v62  ;;  %vm2371_vm4 = vmor %vm784_vm3, %vm785_vm1 }
  0xfc   :  { %1201 = vxpose.xlu0.b32.start [1/16] (narrow) %v943_v13, 32  ;;  %v790_v17 = vand.u32 2147483648, %v1998_v8  ;;  %1364 = vrsqrt.f32 %v2351_v19  ;;  %v572_v43 = vsel %vm570_vm10, %v571_v45, %v569_v0  ;;  %v578_v16 = vmul.f32 %v2292_v39, %v577_v63  ;;  %v2403_v13 = vpop.xlane.xlu1 %262 }
  0xfd   :  { %vm954_vm5 = vcmp.eq.f32.partialorder %v953_v37, 8.507059e+37  ;;  %v787_v58 = vsel %vm2371_vm4, %v2059_v34, %v783_v53  ;;  %vm580_vm6 = vcmp.eq.f32.partialorder %v2242_v57, inf  ;;  %v795_v30 = vmul.f32 %v2051_v33, %v1993_v55 }
  0xfe   :  { %v957_v21 = vsel %vm954_vm5, %v956_v52, %v952_v2  ;;  %v791_v9 = vor.u32 1.1754944e-38, %v790_v17  ;;  %1366 = vrcp.f32 %v2353_v44  ;;  %vm582_vm7 = vcmp.eq.f32.partialorder %v2242_v57, 0.0 }
  0xff   :  { %v583_v8 = vand.u32 2147483648, %v2242_v57  ;;  %v589_v32 = vsub.f32 1.5, %v588_v18  ;;  %vm789_vm8 = vcmp.eq.f32.partialorder %v788_v61, 8.507059e+37  ;;  %v2389_v39 = vmax.f32 %v572_v43, 1e-12 }
 0x100   :  { %vm592_vm9 = vcmp.eq.f32.partialorder %v2281_v31, inf  ;;  %v792_v34 = vsel %vm789_vm8, %v791_v9, %v787_v58  ;;  %v796_v45 = vsub.f32 1.0, %v795_v30  ;;  %v960_v5 = vmul.f32 %v2329_v4, %v2272_v15 }
 0x101   :  { %v579_v11 = vmul.f32 %v578_v16, %v2242_v57  ;;  %v958_v29 = vmul.f32 %v957_v21, %v1616_v46  ;;  %v793_v37 = vmul.f32 %v792_v34, %v1536_v54  ;;  %v805_v62 = vand.u32 2147483648, %v1993_v55 }
 0x102   :  { %v2398_v63 = vpop.eup %1364  ;;  %v797_v7 = vmul.f32 %v2051_v33, %v796_v45  ;;  %vm800_vm10 = vweird.f32 %v2051_v33  ;;  %v803_v51 = vand.u32 2147483647, %v1993_v55  ;;  %v961_v0 = vsub.f32 1.0, %v960_v5 }
 0x103   :  { %v590_v26 = vmul.f32 %v2323_v24, %v589_v32  ;;  %1175 = vxpose.xlu2.b32.cont [7/16] (narrow) %v793_v37, 32  ;;  %v598_v46 = vmul.f32 %v2398_v63, %v2351_v19  ;;  %vm799_vm11 = vweird.f32 %v1993_v55  ;;  %v970_v54 = vand.u32 2147483648, %v2272_v15  ;;  %v2440_v37 = vpop.xlane.xlu2 %265 }
 0x104   :  { %vm594_vm12 = vcmp.eq.f32.partialorder %v2281_v31, 0.0  ;;  %1202 = vxpose.xlu0.b32.cont [2/16] (narrow) %v958_v29, 32  ;;  %v798_v18 = vadd.f32 %v2051_v33, %v797_v7  ;;  %v962_v2 = vmul.f32 %v2329_v4, %v961_v0  ;;  %vm965_vm13 = vweird.f32 %v2329_v4  ;;  %v2415_v24 = vpop.eup %1366  ;;  %vm801_vm14 = vmor %vm799_vm11, %vm800_vm10 }
 0x105   :  { %v968_v53 = vand.u32 2147483647, %v2272_v15  ;;  %v581_v61 = vsel %vm580_vm6, %v2242_v57, %v579_v11  ;;  %v599_v55 = vmul.f32 %v2398_v63, %v598_v46  ;;  %v806_v52 = vor.u32 1.1754944e-38, %v805_v62 }
 0x106   :  { %1368 = vrsqrt.f32 %v2403_v13  ;;  %v802_v50 = vsel %vm801_vm14, %v2051_v33, %v798_v18  ;;  %vm804_vm15 = vcmp.eq.f32.partialorder %v803_v51, 8.507059e+37  ;;  %v963_v17 = vadd.f32 %v2329_v4, %v962_v2 }
 0x107   :  { %vm964_vm0 = vweird.f32 %v2272_v15  ;;  %v591_v43 = vmul.f32 %v590_v26, %v2281_v31  ;;  %v807_v16 = vsel %vm804_vm15, %v806_v52, %v802_v50  ;;  %v971_v58 = vor.u32 1.1754944e-38, %v970_v54 }
 0x108   :  { %vm966_vm1 = vmor %vm964_vm0, %vm965_vm13  ;;  %v810_v21 = vmul.f32 %v2006_v36, %v1938_v3  ;;  %v595_v9 = vand.u32 2147483648, %v2281_v31  ;;  %v600_v30 = vmul.f32 0.5, %v599_v55  ;;  %vm969_vm2 = vcmp.eq.f32.partialorder %v968_v53, 8.507059e+37 }
 0x109   :  { %v967_v32 = vsel %vm966_vm1, %v2329_v4, %v963_v17  ;;  %v808_v33 = vmul.f32 %v807_v16, %v1528_v48  ;;  %v820_v15 = vand.u32 2147483648, %v1938_v3  ;;  %1370 = vrcp.f32 %v2389_v39 }
 0x10a   :  { %v972_v34 = vsel %vm969_vm2, %v971_v58, %v967_v32  ;;  %v811_v45 = vsub.f32 1.0, %v810_v21  ;;  %v584_v5 = vsel %vm582_vm7, %v583_v8, %v581_v61  ;;  %v975_v29 = vmul.f32 %v2314_v6, %v2237_v40 }
 0x10b   :  { %v973_v11 = vmul.f32 %v972_v34, %v1656_v14  ;;  %v593_v48 = vsel %vm592_vm9, %v2281_v31, %v591_v43  ;;  %1176 = vxpose.xlu2.b32.cont [8/16] (narrow) %v808_v33, 32  ;;  %vm815_vm3 = vweird.f32 %v2006_v36  ;;  %v818_v57 = vand.u32 2147483647, %v1938_v3  ;;  %v2482_v34 = vpop.xlane.xlu0 %268 }
 0x10c   :  { %v1369_v4 = vpop.eup %1368  ;;  %v812_v62 = vmul.f32 %v2006_v36, %v811_v45  ;;  %v601_v8 = vsub.f32 1.5, %v600_v30  ;;  %vm814_vm4 = vweird.f32 %v1938_v3  ;;  %v976_v7 = vsub.f32 1.0, %v975_v29 }
 0x10d   :  { %1203 = vxpose.xlu0.b32.cont [3/16] (narrow) %v973_v11, 32  ;;  %v610_v14 = vmul.f32 %v1369_v4, %v2403_v13  ;;  %v821_v0 = vor.u32 1.1754944e-38, %v820_v15  ;;  %v985_v26 = vand.u32 2147483648, %v2237_v40  ;;  %1372 = vrsqrt.f32 %v2440_v37  ;;  %vm816_vm5 = vmor %vm814_vm4, %vm815_vm3 }
 0x10e   :  { %v813_v51 = vadd.f32 %v2006_v36, %v812_v62  ;;  %v977_v54 = vmul.f32 %v2314_v6, %v976_v7  ;;  %vm980_vm6 = vweird.f32 %v2314_v6  ;;  %v983_v18 = vand.u32 2147483647, %v2237_v40 }
 0x10f   :  { %v611_v46 = vmul.f32 %v1369_v4, %v610_v14  ;;  %v2456_v2 = vmax.f32 %v584_v5, 1e-12  ;;  %v596_v3 = vsel %vm594_vm12, %v595_v9, %v593_v48  ;;  %vm819_vm7 = vcmp.eq.f32.partialorder %v818_v57, 8.507059e+37  ;;  %v2461_v61 = vpop.eup %1370 }
 0x110   :  { %v817_v53 = vsel %vm816_vm5, %v2006_v36, %v813_v51  ;;  %v978_v50 = vadd.f32 %v2314_v6, %v977_v54  ;;  %vm979_vm8 = vweird.f32 %v2237_v40  ;;  %vm604_vm9 = vcmp.eq.f32.partialorder %v2351_v19, inf }
 0x111   :  { %v612_v55 = vmul.f32 0.5, %v611_v46  ;;  %v822_v52 = vsel %vm819_vm7, %v821_v0, %v817_v53  ;;  %vm981_vm10 = vmor %vm979_vm8, %vm980_vm6  ;;  %v986_v43 = vor.u32 1.1754944e-38, %v985_v26  ;;  %v825_v31 = vmul.f32 %v2081_v49, %v2027_v56 }
 0x112   :  { %v823_v17 = vmul.f32 %v822_v52, %v1525_v47  ;;  %v2469_v16 = vmax.f32 %v596_v3, 1e-12  ;;  %v602_v36 = vmul.f32 %v2398_v63, %v601_v8  ;;  %v982_v58 = vsel %vm981_vm10, %v2314_v6, %v978_v50 }
 0x113   :  { %vm984_vm11 = vcmp.eq.f32.partialorder %v983_v18, 8.507059e+37  ;;  %v2473_v21 = vpop.eup %1372  ;;  %vm606_vm12 = vcmp.eq.f32.partialorder %v2351_v19, 0.0  ;;  %v607_v40 = vand.u32 2147483648, %v2351_v19  ;;  %v613_v9 = vsub.f32 1.5, %v612_v55 }
 0x114   :  { %1177 = vxpose.xlu2.b32.cont [9/16] (narrow) %v823_v17, 32  ;;  %v987_v47 = vsel %vm984_vm11, %v986_v43, %v982_v58  ;;  %v826_v30 = vsub.f32 1.0, %v825_v31  ;;  %v622_v33 = vmul.f32 %v2473_v21, %v2440_v37  ;;  %v833_v63 = vand.u32 2147483647, %v2027_v56  ;;  %v2856_v58 = vld [vmem:[#allocation11_spill] sm:$0xff] }
 0x115   :  { %v988_v32 = vmul.f32 %v987_v47, %v1652_v12  ;;  %v835_v6 = vand.u32 2147483648, %v2027_v56  ;;  %1374 = vrcp.f32 %v2456_v2  ;;  %vm830_vm13 = vweird.f32 %v2081_v49 }
 0x116   :  { %v827_v45 = vmul.f32 %v2081_v49, %v826_v30  ;;  %v990_v15 = vmul.f32 %v2270_v23, %v2212_v25  ;;  %1376 = vrcp.f32 %v2469_v16  ;;  %v603_v12 = vmul.f32 %v602_v36, %v2351_v19 }
 0x117   :  { %1204 = vxpose.xlu0.b32.cont [4/16] (narrow) %v988_v32, 32  ;;  %v623_v5 = vmul.f32 %v2473_v21, %v622_v33  ;;  %vm829_vm14 = vweird.f32 %v2027_v56  ;;  %v614_v11 = vmul.f32 %v1369_v4, %v613_v9  ;;  %1378 = vrsqrt.f32 %v2482_v34  ;;  %v2533_v33 = vpop.xlane.xlu1 %271 }
 0x118   :  { %v828_v29 = vadd.f32 %v2081_v49, %v827_v45  ;;  %v991_v48 = vsub.f32 1.0, %v990_v15  ;;  %vm831_vm15 = vmor %vm829_vm14, %vm830_vm13  ;;  %vm834_vm0 = vcmp.eq.f32.partialorder %v833_v63, 8.507059e+37  ;;  %v836_v57 = vor.u32 1.1754944e-38, %v835_v6 }
 0x119   :  { %v624_v62 = vmul.f32 0.5, %v623_v5  ;;  %v1000_v8 = vand.u32 2147483648, %v2212_v25  ;;  %vm995_vm1 = vweird.f32 %v2270_v23  ;;  %v998_v56 = vand.u32 2147483647, %v2212_v25 }
 0x11a   :  { %v832_v14 = vsel %vm831_vm15, %v2081_v49, %v828_v29  ;;  %v992_v7 = vmul.f32 %v2270_v23, %v991_v48  ;;  %v605_v4 = vsel %vm604_vm9, %v2351_v19, %v603_v12  ;;  %vm616_vm2 = vcmp.eq.f32.partialorder %v2403_v13, inf }
 0x11b   :  { %vm618_vm3 = vcmp.eq.f32.partialorder %v2403_v13, 0.0  ;;  %v837_v51 = vsel %vm834_vm0, %v836_v57, %v832_v14  ;;  %v2505_v0 = vpop.eup %1374  ;;  %vm994_vm4 = vweird.f32 %v2212_v25  ;;  %v840_v46 = vmul.f32 %v2078_v41, %v2021_v60  ;;  %v2857_v57 = vld [vmem:[#allocation6_spill] sm:$0xff]  ;;  %v2858_v14 = vld [vmem:[#allocation23_spill] sm:$0xff] }
 0x11c   :  { %v838_v26 = vmul.f32 %v837_v51, %v1566_v10  ;;  %v993_v49 = vadd.f32 %v2270_v23, %v992_v7  ;;  %v2512_v54 = vpop.eup %1376  ;;  %v615_v18 = vmul.f32 %v614_v11, %v2403_v13  ;;  %v619_v3 = vand.u32 2147483648, %v2403_v13  ;;  %vm996_vm5 = vmor %vm994_vm4, %vm995_vm1  ;;  %v2859_v7 = vld [vmem:[#allocation26_spill] sm:$0xff] }
 0x11d   :  { %v625_v53 = vsub.f32 1.5, %v624_v62  ;;  %v1001_v55 = vor.u32 1.1754944e-38, %v1000_v8  ;;  %v1379_v52 = vpop.eup %1378  ;;  %vm999_vm6 = vcmp.eq.f32.partialorder %v998_v56, 8.507059e+37  ;;  %v841_v25 = vsub.f32 1.0, %v840_v46  ;;  %v2860_v46 = vld [vmem:[#allocation14_spill] sm:$0xff] }
 0x11e   :  { %1178 = vxpose.xlu2.b32.cont [10/16] (narrow) %v838_v26, 32  ;;  %v997_v10 = vsel %vm996_vm5, %v2270_v23, %v993_v49  ;;  %v850_v50 = vand.u32 2147483648, %v2021_v60  ;;  %v608_v17 = vsel %vm606_vm12, %v607_v40, %v605_v4  ;;  %v634_v31 = vmul.f32 %v1379_v52, %v2482_v34 }
 0x11f   :  { %v1002_v43 = vsel %vm999_vm6, %v1001_v55, %v997_v10  ;;  %v1005_v36 = vmul.f32 %v2347_v59, %v2303_v22  ;;  %v842_v47 = vmul.f32 %v2078_v41, %v841_v25  ;;  %vm845_vm7 = vweird.f32 %v2078_v41 }
 0x120   :  { %v1003_v9 = vmul.f32 %v1002_v43, %v2856_v58  ;;  %v848_v23 = vand.u32 2147483647, %v2021_v60  ;;  %v617_v30 = vsel %vm616_vm2, %v2403_v13, %v615_v18  ;;  %v626_v19 = vmul.f32 %v2473_v21, %v625_v53 }
 0x121   :  { %v635_v40 = vmul.f32 %v1379_v52, %v634_v31  ;;  %v1006_v32 = vsub.f32 1.0, %v1005_v36  ;;  %v843_v63 = vadd.f32 %v2078_v41, %v842_v47  ;;  %vm844_vm8 = vweird.f32 %v2021_v60 }
 0x122   :  { %1205 = vxpose.xlu0.b32.cont [5/16] (narrow) %v1003_v9, 32  ;;  %v851_v6 = vor.u32 1.1754944e-38, %v850_v50  ;;  %vm1010_vm9 = vweird.f32 %v2347_v59  ;;  %vm846_vm10 = vmor %vm844_vm8, %vm845_vm7  ;;  %v1013_v12 = vand.u32 2147483647, %v2303_v22  ;;  %v1015_v21 = vand.u32 2147483648, %v2303_v22 }
 0x123   :  { %v636_v45 = vmul.f32 0.5, %v635_v40  ;;  %v1007_v15 = vmul.f32 %v2347_v59, %v1006_v32  ;;  %v620_v5 = vsel %vm618_vm3, %v619_v3, %v617_v30  ;;  %v847_v11 = vsel %vm846_vm10, %v2078_v41, %v843_v63 }
 0x124   :  { %vm849_vm11 = vcmp.eq.f32.partialorder %v848_v23, 8.507059e+37  ;;  %1380 = vrsqrt.f32 %v2533_v33  ;;  %v627_v60 = vmul.f32 %v626_v19, %v2440_v37  ;;  %vm1009_vm12 = vweird.f32 %v2303_v22 }
 0x125   :  { %v852_v29 = vsel %vm849_vm11, %v851_v6, %v847_v11  ;;  %v1008_v48 = vadd.f32 %v2347_v59, %v1007_v15  ;;  %vm628_vm13 = vcmp.eq.f32.partialorder %v2440_v37, inf  ;;  %v637_v62 = vsub.f32 1.5, %v636_v45  ;;  %vm1011_vm14 = vmor %vm1009_vm12, %vm1010_vm9 }
 0x126   :  { %v853_v8 = vmul.f32 %v852_v29, %v2857_v57  ;;  %v1016_v13 = vor.u32 1.1754944e-38, %v1015_v21  ;;  %vm630_vm15 = vcmp.eq.f32.partialorder %v2440_v37, 0.0  ;;  %vm1014_vm0 = vcmp.eq.f32.partialorder %v1013_v12, 8.507059e+37  ;;  %v2863_v12 = vld [vmem:[#allocation5_spill] sm:$0xff] }
 0x127   :  { %v1012_v41 = vsel %vm1011_vm14, %v2347_v59, %v1008_v48  ;;  %v855_v56 = vmul.f32 %v2859_v7, %v2858_v14  ;;  %v2556_v4 = vmax.f32 %v608_v17, 1e-12  ;;  %v2558_v22 = vmax.f32 %v620_v5, 1e-12 }
 0x128   :  { %v631_v51 = vand.u32 2147483648, %v2440_v37  ;;  %1179 = vxpose.xlu2.b32.cont [11/16] (narrow) %v853_v8, 32  ;;  %v1017_v26 = vsel %vm1014_vm0, %v1016_v13, %v1012_v41  ;;  %v629_v49 = vsel %vm628_vm13, %v2440_v37, %v627_v60  ;;  %v1020_v59 = vmul.f32 %v2334_v42, %v2284_v20 }
 0x129   :  { %v1018_v18 = vmul.f32 %v1017_v26, %v2860_v46  ;;  %v856_v3 = vsub.f32 1.0, %v855_v56  ;;  %v638_v55 = vmul.f32 %v1379_v52, %v637_v62  ;;  %vm860_vm1 = vweird.f32 %v2859_v7  ;;  %v2864_v62 = vld [vmem:[#allocation12_spill] sm:$0xff] }
 0x12a   :  { %v2565_v53 = vpop.eup %1380  ;;  %v863_v10 = vand.u32 2147483647, %v2858_v14  ;;  %v865_v25 = vand.u32 2147483648, %v2858_v14  ;;  %v1021_v17 = vsub.f32 1.0, %v1020_v59  ;;  %vm1024_vm2 = vweird.f32 %v2284_v20 }
 0x12b   :  { %1206 = vxpose.xlu0.b32.cont [6/16] (narrow) %v1018_v18, 32  ;;  %v857_v50 = vmul.f32 %v2859_v7, %v856_v3  ;;  %vm1025_vm3 = vweird.f32 %v2334_v42  ;;  %vm640_vm4 = vcmp.eq.f32.partialorder %v2482_v34, inf  ;;  %vm859_vm5 = vweird.f32 %v2858_v14 }
 0x12c   :  { %v1028_v52 = vand.u32 2147483647, %v2284_v20  ;;  %v1030_v43 = vand.u32 2147483648, %v2284_v20  ;;  %v870_v31 = vmul.f32 %v2158_v27, %v2070_v35  ;;  %v632_v36 = vsel %vm630_vm15, %v631_v51, %v629_v49  ;;  %vm861_vm6 = vmor %vm859_vm5, %vm860_vm1 }
 0x12d   :  { %v646_v58 = vmul.f32 %v2565_v53, %v2533_v33  ;;  %v858_v9 = vadd.f32 %v2859_v7, %v857_v50  ;;  %v1022_v47 = vmul.f32 %v2334_v42, %v1021_v17  ;;  %v639_v23 = vmul.f32 %v638_v55, %v2482_v34  ;;  %vm2588_vm7 = vmor %vm1024_vm2, %vm1025_vm3  ;;  %v2868_v55 = vld [vmem:[#allocation9_spill] sm:$0xff] }
 0x12e   :  { %v866_v30 = vor.u32 1.1754944e-38, %v865_v25  ;;  %v1031_v19 = vor.u32 1.1754944e-38, %v1030_v43  ;;  %v871_v37 = vsub.f32 1.0, %v870_v31  ;;  %vm864_vm8 = vcmp.eq.f32.partialorder %v863_v10, 8.507059e+37 }
 0x12f   :  { %v862_v40 = vsel %vm861_vm6, %v2859_v7, %v858_v9  ;;  %v1023_v32 = vadd.f32 %v2334_v42, %v1022_v47  ;;  %vm1029_vm9 = vcmp.eq.f32.partialorder %v1028_v52, 8.507059e+37  ;;  %vm875_vm10 = vweird.f32 %v2158_v27  ;;  %v2865_v7 = vld [vmem:[#allocation25_spill] sm:$0xff] }
 0x130   :  { %v867_v63 = vsel %vm864_vm8, %v866_v30, %v862_v40  ;;  %v872_v6 = vmul.f32 %v2158_v27, %v871_v37  ;;  %v878_v45 = vand.u32 2147483647, %v2070_v35  ;;  %v647_v15 = vmul.f32 %v2565_v53, %v646_v58  ;;  %v2869_v30 = vld [vmem:[#allocation13_spill] sm:$0xff]  ;;  %v2870_v37 = vld [vmem:[#allocation24_spill] sm:$0xff]  ;;  %v2871_v40 = vld [vmem:[#allocation27_spill] sm:$0xff] }
 0x131   :  { %v868_v21 = vmul.f32 %v867_v63, %v2863_v12  ;;  %v1027_v5 = vsel %vm2588_vm7, %v2334_v42, %v1023_v32  ;;  %v880_v11 = vand.u32 2147483648, %v2070_v35  ;;  %vm874_vm11 = vweird.f32 %v2070_v35 }
 0x132   :  { %v1032_v60 = vsel %vm1029_vm9, %v1031_v19, %v1027_v5  ;;  %v873_v29 = vadd.f32 %v2158_v27, %v872_v6  ;;  %v1035_v48 = vmul.f32 %v2415_v24, %v2353_v44  ;;  %vm876_vm12 = vmor %vm874_vm11, %vm875_vm10  ;;  %vm879_vm13 = vcmp.eq.f32.partialorder %v878_v45, 8.507059e+37 }
 0x133   :  { %1180 = vxpose.xlu2.b32.cont [12/16] (narrow) %v868_v21, 32  ;;  %v1033_v57 = vmul.f32 %v1032_v60, %v2864_v62  ;;  %v881_v8 = vor.u32 1.1754944e-38, %v880_v11  ;;  %vm1039_vm14 = vweird.f32 %v2353_v44  ;;  %vm1040_vm15 = vweird.f32 %v2415_v24 }
 0x134   :  { %v877_v42 = vsel %vm876_vm12, %v2158_v27, %v873_v29  ;;  %v1036_v13 = vsub.f32 1.0, %v1035_v48  ;;  %v1043_v41 = vand.u32 2147483647, %v2353_v44  ;;  %1382 = vrcp.f32 %v2556_v4  ;;  %vm2628_vm0 = vmor %vm1039_vm14, %vm1040_vm15  ;;  %v2874_v29 = vld [vmem:[#allocation8_spill] sm:$0xff] }
 0x135   :  { %1207 = vxpose.xlu0.b32.cont [7/16] (narrow) %v1033_v57, 32  ;;  %v882_v35 = vsel %vm879_vm13, %v881_v8, %v877_v42  ;;  %v1045_v14 = vand.u32 2147483648, %v2353_v44  ;;  %v885_v56 = vmul.f32 %v2117_v38, %v2865_v7  ;;  %1384 = vrcp.f32 %v2558_v22 }
 0x136   :  { %v2617_v51 = vmax.f32 %v632_v36, 1e-12  ;;  %v643_v27 = vand.u32 2147483648, %v2482_v34  ;;  %v1037_v26 = vmul.f32 %v2415_v24, %v1036_v13  ;;  %v2624_v49 = vsel %vm640_vm4, %v2482_v34, %v639_v23 }
 0x137   :  { %v648_v46 = vmul.f32 0.5, %v647_v15  ;;  %v1046_v3 = vor.u32 1.1754944e-38, %v1045_v14  ;;  %v886_v59 = vsub.f32 1.0, %v885_v56  ;;  %v883_v10 = vmul.f32 %v882_v35, %v2868_v55  ;;  %v2875_v56 = vld [vmem:[#allocation17_spill] sm:$0xff] }
 0x138   :  { %v1038_v25 = vadd.f32 %v2415_v24, %v1037_v26  ;;  %vm1044_vm1 = vcmp.eq.f32.partialorder %v1043_v41, 8.507059e+37  ;;  %v895_v50 = vand.u32 2147483648, %v2865_v7  ;;  %vm890_vm2 = vweird.f32 %v2117_v38 }
 0x139   :  { %v887_v17 = vmul.f32 %v2117_v38, %v886_v59  ;;  %v893_v52 = vand.u32 2147483647, %v2865_v7  ;;  %v1050_v44 = vmul.f32 %v2461_v61, %v2389_v39  ;;  %vm889_vm3 = vweird.f32 %v2865_v7 }
 0x13a   :  { %v1042_v43 = vsel %vm2628_vm0, %v2415_v24, %v1038_v25  ;;  %v896_v31 = vor.u32 1.1754944e-38, %v895_v50  ;;  %vm1054_vm4 = vweird.f32 %v2389_v39  ;;  %v2645_v36 = vpop.eup %1382  ;;  %vm1055_vm5 = vweird.f32 %v2461_v61  ;;  %vm891_vm6 = vmor %vm889_vm3, %vm890_vm2 }
 0x13b   :  { %1181 = vxpose.xlu2.b32.cont [13/16] (narrow) %v883_v10, 32  ;;  %v1047_v58 = vsel %vm1044_vm1, %v1046_v3, %v1042_v43  ;;  %v888_v9 = vadd.f32 %v2117_v38, %v887_v17  ;;  %v1051_v47 = vsub.f32 1.0, %v1050_v44  ;;  %v2649_v23 = vpop.eup %1384  ;;  %v1058_v24 = vand.u32 2147483647, %v2389_v39  ;;  %vm2662_vm8 = vmor %vm1054_vm4, %vm1055_vm5 }
 0x13c   :  { %v1048_v20 = vmul.f32 %v1047_v58, %v2869_v30  ;;  %v1060_v19 = vand.u32 2147483648, %v2389_v39  ;;  %v900_v32 = vmul.f32 %v2871_v40, %v2870_v37  ;;  %v649_v63 = vsub.f32 1.5, %v648_v46 }
 0x13d   :  { %v892_v6 = vsel %vm891_vm6, %v2117_v38, %v888_v9  ;;  %vm894_vm7 = vcmp.eq.f32.partialorder %v893_v52, 8.507059e+37  ;;  %v1052_v45 = vmul.f32 %v2461_v61, %v1051_v47  ;;  %vm904_vm9 = vweird.f32 %v2870_v37  ;;  %v2880_v52 = vld [vmem:[#allocation7_spill] sm:$0xff] }
 0x13e   :  { %1208 = vxpose.xlu0.b32.cont [8/16] (narrow) %v1048_v20, 32  ;;  %v897_v15 = vsel %vm894_vm7, %v896_v31, %v892_v6  ;;  %v1061_v21 = vor.u32 1.1754944e-38, %v1060_v19  ;;  %v901_v5 = vsub.f32 1.0, %v900_v32  ;;  %vm1059_vm10 = vcmp.eq.f32.partialorder %v1058_v24, 8.507059e+37  ;;  %v2885_v32 = vld [vmem:[#allocation15_spill] sm:$0xff] }
 0x13f   :  { %v1053_v11 = vadd.f32 %v2461_v61, %v1052_v45  ;;  %v908_v38 = vand.u32 2147483647, %v2870_v37  ;;  %v910_v60 = vand.u32 2147483648, %v2870_v37  ;;  %v898_v48 = vmul.f32 %v897_v15, %v2874_v29 }
 0x140   :  { %v902_v62 = vmul.f32 %v2871_v40, %v901_v5  ;;  %vm905_vm11 = vweird.f32 %v2871_v40  ;;  %v1065_v39 = vmul.f32 %v2505_v0, %v2456_v2  ;;  %vm642_vm12 = vcmp.eq.f32.partialorder %v2482_v34, 0.0 }
 0x141   :  { %v1057_v57 = vsel %vm2662_vm8, %v2461_v61, %v1053_v11  ;;  %vm1069_vm13 = vweird.f32 %v2456_v2  ;;  %vm1070_vm14 = vweird.f32 %v2505_v0  ;;  %v1073_v8 = vand.u32 2147483647, %v2456_v2  ;;  %vm906_vm15 = vmor %vm904_vm9, %vm905_vm11 }
 0x142   :  { %v1062_v42 = vsel %vm1059_vm10, %v1061_v21, %v1057_v57  ;;  %v903_v13 = vadd.f32 %v2871_v40, %v902_v62  ;;  %v1066_v41 = vsub.f32 1.0, %v1065_v39  ;;  %v1075_v35 = vand.u32 2147483648, %v2456_v2  ;;  %vm2700_vm2 = vmor %vm1069_vm13, %vm1070_vm14 }
 0x143   :  { %v650_v14 = vmul.f32 %v2565_v53, %v649_v63  ;;  %1182 = vxpose.xlu2.b32.cont [14/16] (narrow) %v898_v48, 32  ;;  %vm909_vm0 = vcmp.eq.f32.partialorder %v908_v38, 8.507059e+37  ;;  %v911_v61 = vor.u32 1.1754944e-38, %v910_v60  ;;  %v915_v7 = vmul.f32 %v2220_v28, %v2169_v1  ;;  %v2886_v38 = vld [vmem:[#allocation10_spill] sm:$0xff] }
 0x144   :  { %v1063_v26 = vmul.f32 %v1062_v42, %v2875_v56  ;;  %v907_v46 = vsel %vm906_vm15, %v2871_v40, %v903_v13  ;;  %v1067_v18 = vmul.f32 %v2505_v0, %v1066_v41  ;;  %vm2692_vm1 = vcmp.eq.f32.partialorder %v1073_v8, 8.507059e+37  ;;  %v2887_v8 = vld [vmem:[#allocation16_spill] sm:$0xff] }
 0x145   :  { %v912_v53 = vsel %vm909_vm0, %v911_v61, %v907_v46  ;;  %v1076_v55 = vor.u32 1.1754944e-38, %v1075_v35  ;;  %v916_v10 = vsub.f32 1.0, %v915_v7  ;;  %vm919_vm3 = vweird.f32 %v2169_v1 }
 0x146   :  { %1209 = vxpose.xlu0.b32.cont [9/16] (narrow) %v1063_v26, 32  ;;  %v1068_v25 = vadd.f32 %v2505_v0, %v1067_v18  ;;  %vm920_vm4 = vweird.f32 %v2220_v28  ;;  %v923_v50 = vand.u32 2147483647, %v2169_v1  ;;  %v1080_v17 = vmul.f32 %v2512_v54, %v2469_v16 }
 0x147   :  { %v913_v2 = vmul.f32 %v912_v53, %v2880_v52  ;;  %v917_v44 = vmul.f32 %v2220_v28, %v916_v10  ;;  %v925_v43 = vand.u32 2147483648, %v2169_v1  ;;  %vm1084_vm5 = vweird.f32 %v2469_v16  ;;  %vm2729_vm7 = vmor %vm919_vm3, %vm920_vm4 }
 0x148   :  { %v1072_v31 = vsel %vm2700_vm2, %v2505_v0, %v1068_v25  ;;  %v1081_v58 = vsub.f32 1.0, %v1080_v17  ;;  %vm1085_vm6 = vweird.f32 %v2512_v54  ;;  %v1088_v9 = vand.u32 2147483647, %v2469_v16  ;;  %v2890_v0 = vld [vmem:[#allocation19_spill] sm:$0xff] }
 0x149   :  { %v1077_v47 = vsel %vm2692_vm1, %v1076_v55, %v1072_v31  ;;  %v918_v30 = vadd.f32 %v2220_v28, %v917_v44  ;;  %v1090_v20 = vand.u32 2147483648, %v2469_v16  ;;  %v1095_v24 = vmul.f32 %v2645_v36, %v2556_v4  ;;  %vm2738_vm8 = vmor %vm1084_vm5, %vm1085_vm6  ;;  %v2889_v44 = vld [vmem:[#allocation18_spill] sm:$0xff] }
 0x14a   :  { %v1082_v19 = vmul.f32 %v2512_v54, %v1081_v58  ;;  %1386 = vrcp.f32 %v2617_v51  ;;  %v644_v1 = vsel %vm642_vm12, %v643_v27, %v2624_v49  ;;  %v1078_v63 = vmul.f32 %v1077_v47, %v2885_v32 }
 0x14b   :  { %1183 = vxpose.xlu2.b32.cont [15/16] (narrow) %v913_v2, 32  ;;  %v922_v16 = vsel %vm2729_vm7, %v2220_v28, %v918_v30  ;;  %v1096_v40 = vsub.f32 1.0, %v1095_v24  ;;  %v926_v6 = vor.u32 1.1754944e-38, %v925_v43  ;;  %v651_v15 = vmul.f32 %v650_v14, %v2533_v33 }
 0x14c   :  { %v1083_v45 = vadd.f32 %v2512_v54, %v1082_v19  ;;  %vm924_vm9 = vcmp.eq.f32.partialorder %v923_v50, 8.507059e+37  ;;  %vm1089_vm10 = vcmp.eq.f32.partialorder %v1088_v9, 8.507059e+37  ;;  %v1091_v28 = vor.u32 1.1754944e-38, %v1090_v20 }
 0x14d   :  { %v927_v12 = vsel %vm924_vm9, %v926_v6, %v922_v16  ;;  %v1097_v5 = vmul.f32 %v2645_v36, %v1096_v40  ;;  %v1110_v34 = vmul.f32 %v2649_v23, %v2558_v22  ;;  %vm652_vm11 = vcmp.eq.f32.partialorder %v2533_v33, inf }
 0x14e   :  { %1210 = vxpose.xlu0.b32.cont [10/16] (narrow) %v1078_v63, 32  ;;  %v1087_v21 = vsel %vm2738_vm8, %v2512_v54, %v1083_v45  ;;  %vm654_vm12 = vcmp.eq.f32.partialorder %v2533_v33, 0.0  ;;  %v655_v27 = vand.u32 2147483648, %v2533_v33  ;;  %vm1099_vm13 = vweird.f32 %v2556_v4  ;;  %v2891_v45 = vld [vmem:[#allocation21_spill] sm:$0xff] }
 0x14f   :  { %vm1100_vm14 = vweird.f32 %v2645_v36  ;;  %v2761_v11 = vmax.f32 %v644_v1, 1e-12  ;;  %v928_v54 = vmul.f32 %v927_v12, %v2886_v38  ;;  %v1092_v60 = vsel %vm1089_vm10, %v1091_v28, %v1087_v21 }
 0x150   :  { %v1387_v49 = vpop.eup %1386  ;;  %v1105_v29 = vand.u32 2147483648, %v2556_v4  ;;  %v653_v48 = vsel %vm652_vm11, %v2533_v33, %v651_v15  ;;  %v1098_v62 = vadd.f32 %v2645_v36, %v1097_v5  ;;  %v1103_v39 = vand.u32 2147483647, %v2556_v4  ;;  %vm1101_vm15 = vmor %vm1099_vm13, %vm1100_vm14 }
 0x151   :  { %v1111_v57 = vsub.f32 1.0, %v1110_v34  ;;  %v1093_v42 = vmul.f32 %v1092_v60, %v2887_v8  ;;  %1388 = vrcp.f32 %v2761_v11  ;;  %v656_v13 = vsel %vm654_vm12, %v655_v27, %v653_v48  ;;  %v2892_v34 = vld [vmem:[#allocation22_spill] sm:$0xff] }
 0x152   :  { %v1106_v41 = vor.u32 1.1754944e-38, %v1105_v29  ;;  %v1102_v35 = vsel %vm1101_vm15, %v2645_v36, %v1098_v62  ;;  %vm1104_vm0 = vcmp.eq.f32.partialorder %v1103_v39, 8.507059e+37  ;;  %v1125_v61 = vmul.f32 %v1387_v49, %v2617_v51  ;;  %v2888_v36 = vld [vmem:[#allocation20_spill] sm:$0xff] }
 0x153   :  { %1184 = vxpose.xlu2.b32.end [16/16] (narrow) %v928_v54, 32  ;;  %v1112_v14 = vmul.f32 %v2649_v23, %v1111_v57  ;;  %vm1114_vm1 = vweird.f32 %v2558_v22  ;;  %vm1115_vm2 = vweird.f32 %v2649_v23  ;;  %v688_v4 = vmax.f32 %v656_v13, 1e-12 }
 0x154   :  { %v1107_v7 = vsel %vm1104_vm0, %v1106_v41, %v1102_v35  ;;  %v1120_v56 = vand.u32 2147483648, %v2558_v22  ;;  %v1118_v26 = vand.u32 2147483647, %v2558_v22  ;;  %v1126_v46 = vsub.f32 1.0, %v1125_v61  ;;  %vm1116_vm3 = vmor %vm1114_vm1, %vm1115_vm2 }
 0x155   :  { %v1113_v33 = vadd.f32 %v2649_v23, %v1112_v14  ;;  %v1108_v3 = vmul.f32 %v1107_v7, %v2888_v36  ;;  %1390 = vrcp.f32 %v688_v4  ;;  %vm1129_vm5 = vweird.f32 %v2617_v51 }
 0x156   :  { %1211 = vxpose.xlu0.b32.cont [11/16] (narrow) %v1093_v42, 32  ;;  %v1121_v53 = vor.u32 1.1754944e-38, %v1120_v56  ;;  %vm1119_vm4 = vcmp.eq.f32.partialorder %v1118_v26, 8.507059e+37  ;;  %v1127_v55 = vmul.f32 %v1387_v49, %v1126_v46  ;;  %vm1130_vm6 = vweird.f32 %v1387_v49 }
 0x157   :  { %v1389_v18 = vpop.eup %1388  ;;  %v1117_v59 = vsel %vm1116_vm3, %v2649_v23, %v1113_v33  ;;  %v1135_v22 = vand.u32 2147483648, %v2617_v51  ;;  %v1133_v17 = vand.u32 2147483647, %v2617_v51  ;;  %vm1131_vm7 = vmor %vm1129_vm5, %vm1130_vm6  ;;  %vm1144_vm9 = vweird.f32 %v2761_v11 }
 0x158   :  { %v1140_v10 = vmul.f32 %v1389_v18, %v2761_v11  ;;  %v1122_v25 = vsel %vm1119_vm4, %v1121_v53, %v1117_v59  ;;  %v1128_v50 = vadd.f32 %v1387_v49, %v1127_v55  ;;  %vm1145_vm10 = vweird.f32 %v1389_v18 }
 0x159   :  { %v1123_v43 = vmul.f32 %v1122_v25, %v2889_v44  ;;  %v1136_v31 = vor.u32 1.1754944e-38, %v1135_v22  ;;  %vm1134_vm8 = vcmp.eq.f32.partialorder %v1133_v17, 8.507059e+37  ;;  %v1150_v30 = vand.u32 2147483648, %v2761_v11  ;;  %vm1146_vm11 = vmor %vm1144_vm9, %vm1145_vm10 }
 0x15a   :  { %v1141_v52 = vsub.f32 1.0, %v1140_v10  ;;  %v1132_v23 = vsel %vm1131_vm7, %v1387_v49, %v1128_v50  ;;  %v1148_v51 = vand.u32 2147483647, %v2761_v11  ;;  %vm1159_vm13 = vweird.f32 %v688_v4 }
 0x15b   :  { %v1391_v2 = vpop.eup %1390  ;;  %v1137_v47 = vsel %vm1134_vm8, %v1136_v31, %v1132_v23  ;;  %v1151_v16 = vor.u32 1.1754944e-38, %v1150_v30  ;;  %v1165_v32 = vand.u32 2147483648, %v688_v4  ;;  %v1163_v6 = vand.u32 2147483647, %v688_v4 }
 0x15c   :  { %v1142_v58 = vmul.f32 %v1389_v18, %v1141_v52  ;;  %v1155_v9 = vmul.f32 %v1391_v2, %v688_v4  ;;  %v1138_v19 = vmul.f32 %v1137_v47, %v2890_v0  ;;  %vm1149_vm12 = vcmp.eq.f32.partialorder %v1148_v51, 8.507059e+37 }
 0x15d   :  { %vm1160_vm14 = vweird.f32 %v1391_v2  ;;  %v1166_v12 = vor.u32 1.1754944e-38, %v1165_v32  ;;  %vm1164_vm0 = vcmp.eq.f32.partialorder %v1163_v6, 8.507059e+37 }
 0x15e   :  { %1212 = vxpose.xlu0.b32.cont [12/16] (narrow) %v1108_v3, 32  ;;  %v1143_v20 = vadd.f32 %v1389_v18, %v1142_v58  ;;  %v1156_v24 = vsub.f32 1.0, %v1155_v9  ;;  %vm1161_vm15 = vmor %vm1159_vm13, %vm1160_vm14 }
 0x160   :  { %v1147_v37 = vsel %vm1146_vm11, %v1389_v18, %v1143_v20  ;;  %v1157_v40 = vmul.f32 %v1391_v2, %v1156_v24 }
 0x161   :  { %v1152_v1 = vsel %vm1149_vm12, %v1151_v16, %v1147_v37 }
 0x162   :  { %v1158_v63 = vadd.f32 %v1391_v2, %v1157_v40  ;;  %v1153_v15 = vmul.f32 %v1152_v1, %v2891_v45 }
 0x164   :  { %v1162_v21 = vsel %vm1161_vm15, %v1391_v2, %v1158_v63 }
 0x165   :  { %v1167_v5 = vsel %vm1164_vm0, %v1166_v12, %v1162_v21 }
 0x166   :  { %1213 = vxpose.xlu0.b32.cont [13/16] (narrow) %v1123_v43, 32  ;;  %v1168_v27 = vmul.f32 %v1167_v5, %v2892_v34 }
 0x16e   :  { %1214 = vxpose.xlu0.b32.cont [14/16] (narrow) %v1138_v19, 32 }
 0x174   :  { %v1185_v28 = vpop.trf.xlu2 }
 0x175   :  { %1233 = vst [vmem:[#allocation2] sm:$0xff] %v1185_v28 }
 0x176   :  { %1215 = vxpose.xlu0.b32.cont [15/16] (narrow) %v1153_v15, 32 }
 0x17c   :  { %v1186_v49 = vpop.trf.xlu2 }
 0x17d   :  { %1235 = vst [vmem:[#allocation2 + $0x10] sm:$0xff] %v1186_v49 }
 0x17e   :  { %1216 = vxpose.xlu0.b32.end [16/16] (narrow) %v1168_v27, 32 }
 0x184   :  { %v1187_v11 = vpop.trf.xlu2 }
 0x185   :  { %1237 = vst [vmem:[#allocation2 + $0x20] sm:$0xff] %v1187_v11 }
 0x18c   :  { %v1188_v38 = vpop.trf.xlu2 }
 0x18d   :  { %1239 = vst [vmem:[#allocation2 + $0x30] sm:$0xff] %v1188_v38 }
 0x1aa   :  { %v1217_v54 = vpop.trf.xlu0 }
 0x1ab   :  { %1234 = vst [vmem:[#allocation2 + $0x8] sm:$0xff] %v1217_v54 }
 0x1b2   :  { %v1218_v60 = vpop.trf.xlu0 }
 0x1b3   :  { %1236 = vst [vmem:[#allocation2 + $0x18] sm:$0xff] %v1218_v60 }
 0x1ba   :  { %v1219_v29 = vpop.trf.xlu0 }
 0x1bb   :  { %1238 = vst [vmem:[#allocation2 + $0x28] sm:$0xff] %v1219_v29 }
 0x1c2   :  { %v1220_v48 = vpop.trf.xlu0 }
 0x1c3   :  { %1240 = vst [vmem:[#allocation2 + $0x38] sm:$0xff] %v1220_v48 }
 0x1c4   :  { %1253 = dma.vmem_to_hbm [thread:$0]  %s1246_s19, 1024, %s1248_s22, [#allocation3], %s1419_s1, %s1419_s1, %s1420_s23  }
 0x1c5   :  { %1416 = dma.done.wait [#allocation3], 1024  }
 0x1c6   :  { %1417 = vsyncadd [#allocation3], 4294966272 }
 0x1c7   :  { %1258 = vsyncpa [#allocation3], 1 }

</bundles_post_ra>
